<compile_context>
chip_gen: v7x
topology: tpu7x:2x2x1
jax: 0.10.0
libtpu: 0.0.40
codegen_flags: <defaults>
</compile_context>

<pallas_src>
import functools

import jax
import jax.numpy as jnp
from jax.experimental import pallas as pl
from jax.experimental.pallas import tpu as pltpu


# ---------------------------------------------------------------------------
# Fused decoder kernel (one batch element per grid step)
# ---------------------------------------------------------------------------
def _decoder_kernel(x_ref, rw1_ref, rb1_ref, rw2_ref, rb2_ref,
                    c1w_ref, c1b_ref, c2w_ref, c2b_ref, fw_ref, fb_ref,
                    o_ref, *, L_valid):
    """Fused CalciumDecoder forward.  Activation layout: (channels, length).

    x_ref   : (1, Ce, Lp)       latent, zero padded to Lp lanes (Lp % 128 == 0)
    rw1_ref : (nres, H, 3*Ce)   residual conv3 taps, flattened tap-major
    rb1_ref : (nres, H, 1)
    rw2_ref : (nres, Ce, H)     residual 1x1 conv
    rb2_ref : (nres, Ce, 1)
    c1w_ref : (3, Nh, Ce)       ConvTranspose1d #1 taps (tap k = W[:, :, k]^T)
    c1b_ref : (Nh, 1)
    c2w_ref : (5, Nh2, Nh)      ConvTranspose1d #2 taps
    c2b_ref : (Nh2, 1)
    fw_ref  : (Cout, 7*Nh2)     final conv taps, flattened tap-major
    fb_ref  : (Cout, 1)
    o_ref   : (1, 4, Cout, Lp)  4 length-phases of the output:
                                out[:, 4*j + r] == o_ref[0, r, :, j]
    """
    f32 = jnp.float32
    x = x_ref[0]                                  # (Ce, Lp)
    Lp = x.shape[1]
    nres = rw1_ref.shape[0]

    def mm(a, b):
        return jnp.dot(a, b, preferred_element_type=f32)

    # Validity mask along the padded length axis: keeps the padded tail of every
    # intermediate exactly zero so shifted taps read correct boundary zeros.
    if L_valid < Lp:
        lane = jax.lax.broadcasted_iota(jnp.int32, (1, Lp), 1)
        valid = (lane < L_valid).astype(f32)
        mask = lambda m: m * valid
    else:
        mask = lambda m: m

    def cshift(m, q):
        """out[:, j] = m[:, j + q], zero-filled outside [0, Lp)."""
        if q == 0:
            return m
        rows = m.shape[0]
        z = jnp.zeros((rows, 128), m.dtype)       # lane-aligned zero block
        if q > 0:
            cat = jnp.concatenate([m, z], axis=1)
            return cat[:, q:q + Lp]
        cat = jnp.concatenate([z, m], axis=1)
        return cat[:, 128 + q:128 + q + Lp]

    # ---- residual stack: x += conv1x1(relu(conv3(relu(x)))) -----------------
    for i in range(nres):
        xr = jnp.maximum(x, 0.0)
        xcat = jnp.concatenate([cshift(xr, -1), xr, cshift(xr, 1)], axis=0)  # (3Ce, Lp)
        h = jnp.maximum(mm(rw1_ref[i], xcat) + rb1_ref[i], 0.0)              # (H, Lp)
        x = mask(x + mm(rw2_ref[i], h) + rb2_ref[i])                         # (Ce, Lp)

    # ---- ConvTranspose1d #1 (k=3, s=2, p=1, op=1) + ReLU, polyphase ---------
    #   x1[2j]   = W1_1^T x[j]
    #   x1[2j+1] = W1_0^T x[j+1] + W1_2^T x[j]
    b1c = c1b_ref[...]
    a_ph = mask(jnp.maximum(mm(c1w_ref[1], x) + b1c, 0.0))                   # (Nh, Lp)
    b_ph = mask(jnp.maximum(
        mm(c1w_ref[0], cshift(x, 1)) + mm(c1w_ref[2], x) + b1c, 0.0))        # (Nh, Lp)

    # ---- ConvTranspose1d #2 (k=5, s=2, p=2, op=1) + ReLU, polyphase ---------
    # With x1 = (A=even, B=odd) phases above, x2 splits into 4 phases:
    #   x2[4j+0] = W2_0^T B[j]   + W2_2^T A[j] + W2_4^T B[j-1]
    #   x2[4j+1] = W2_1^T B[j]   + W2_3^T A[j]
    #   x2[4j+2] = W2_0^T A[j+1] + W2_2^T B[j] + W2_4^T A[j]
    #   x2[4j+3] = W2_1^T A[j+1] + W2_3^T B[j]
    b2c = c2b_ref[...]
    a_nxt = cshift(a_ph, 1)        # A[j+1]
    b_prv = cshift(b_ph, -1)       # B[j-1]
    d0 = mm(c2w_ref[0], b_ph) + mm(c2w_ref[2], a_ph) + mm(c2w_ref[4], b_prv) + b2c
    d1 = mm(c2w_ref[1], b_ph) + mm(c2w_ref[3], a_ph) + b2c
    d2 = mm(c2w_ref[0], a_nxt) + mm(c2w_ref[2], b_ph) + mm(c2w_ref[4], a_ph) + b2c
    d3 = mm(c2w_ref[1], a_nxt) + mm(c2w_ref[3], b_ph) + b2c
    d = [mask(jnp.maximum(v, 0.0)) for v in (d0, d1, d2, d3)]   # (Nh2, Lp) each

    # ---- final Conv1d (k=7, s=1, p=3), phase-split, im2col over 7 taps ------
    #   out[4j + r] = sum_k Wf_k x2[4j + r + k - 3]
    #   x2[4j + dlt] = d[dlt % 4][:, j + dlt // 4]
    fbc = fb_ref[...]
    fcat = fw_ref[...]                                            # (Cout, 7*Nh2)
    dsh = {dlt: cshift(d[dlt % 4], dlt // 4) for dlt in range(-3, 7)}
    for r in range(4):
        zcat = jnp.concatenate([dsh[r + k - 3] for k in range(7)], axis=0)  # (7*Nh2, Lp)
        o_ref[0, r] = (mm(fcat, zcat) + fbc).astype(o_ref.dtype)


# ---------------------------------------------------------------------------
# pallas_call wrapper
# ---------------------------------------------------------------------------
def _broadcast_spec(arr):
    """Whole-array block, re-used at every grid step (weights)."""
    zeros = (0,) * arr.ndim
    return pl.BlockSpec(arr.shape, lambda b, _z=zeros: _z)


@jax.jit
def calcium_decoder_forward(x_ncl, params):
    """CalciumDecoder forward.  x_ncl: (B, embedding_dim, L) in PyTorch NCL.

    Returns (B, output_channels, 4 * L) in NCL layout.
    """
    B, Ce, L0 = x_ncl.shape
    Lp = ((L0 + 127) // 128) * 128                # lane-align the length axis
    if Lp != L0:
        x_ncl = jnp.pad(x_ncl, ((0, 0), (0, 0), (0, Lp - L0)))
    Cout = params["cf_b"].shape[0]

    weight_args = (params["res_w1"], params["res_b1"], params["res_w2"],
                   params["res_b2"], params["ct1_w"], params["ct1_b"],
                   params["ct2_w"], params["ct2_b"], params["cf_w"],
                   params["cf_b"])
    in_specs = ([pl.BlockSpec((1, Ce, Lp), lambda b: (b, 0, 0))]
                + [_broadcast_spec(w) for w in weight_args])

    phases = pl.pallas_call(
        functools.partial(_decoder_kernel, L_valid=L0),
        out_shape=jax.ShapeDtypeStruct((B, 4, Cout, Lp), x_ncl.dtype),
        grid=(B,),
        in_specs=in_specs,
        out_specs=pl.BlockSpec((1, 4, Cout, Lp), lambda b: (b, 0, 0, 0)),
        compiler_params=pltpu.CompilerParams(
            dimension_semantics=("parallel",)),   # v7x: one TC per batch element
    )(x_ncl, *weight_args)

    # Un-phase the output: out[b, c, 4*j + r] = phases[b, r, c, j]  (tiny op).
    out = phases[:, :, :, :L0]
    out = jnp.transpose(out, (0, 2, 3, 1)).reshape(B, Cout, 4 * L0)
    return out


# ---------------------------------------------------------------------------
# Parameter construction (PyTorch layouts) and packing into kernel layouts
# ---------------------------------------------------------------------------
def _conv1d_w_flat(w_pt):
    """PyTorch Conv1d weight (Cout, Cin, K) -> (Cout, K*Cin), tap-major blocks."""
    cout, cin, k = w_pt.shape
    return jnp.transpose(w_pt, (0, 2, 1)).reshape(cout, k * cin)


def _convT1d_w_taps(w_pt):
    """PyTorch ConvTranspose1d weight (Cin, Cout, K) -> (K, Cout, Cin)."""
    return jnp.transpose(w_pt, (2, 1, 0))


def pack_params(pt):
    """Convert PyTorch-layout weights into the kernel's matmul-ready layouts."""
    col = lambda b: b.reshape(-1, 1)
    return {
        "res_w1": jnp.stack([_conv1d_w_flat(w1) for (w1, _, _, _) in pt["res"]]),
        "res_b1": jnp.stack([col(b1) for (_, b1, _, _) in pt["res"]]),
        "res_w2": jnp.stack([w2[:, :, 0] for (_, _, w2, _) in pt["res"]]),
        "res_b2": jnp.stack([col(b2) for (_, _, _, b2) in pt["res"]]),
        "ct1_w": _convT1d_w_taps(pt["ct1_w"]),
        "ct1_b": col(pt["ct1_b"]),
        "ct2_w": _convT1d_w_taps(pt["ct2_w"]),
        "ct2_b": col(pt["ct2_b"]),
        "cf_w": _conv1d_w_flat(pt["cf_w"]),
        "cf_b": col(pt["cf_b"]),
    }


def init_pt_params(key, embedding_dim, num_hiddens, num_residual_layers,
                   num_residual_hiddens, output_channels):
    keys = iter(jax.random.split(key, 4 * num_residual_layers + 6))
    scale = 0.1
    rnd = lambda shape: scale * jax.random.normal(next(keys), shape, jnp.float32)

    pt = {"res": []}
    Ce, H = embedding_dim, num_residual_hiddens
    for _ in range(num_residual_layers):
        pt["res"].append((rnd((H, Ce, 3)), rnd((H,)),      # Conv1d(Ce->H, k=3)
                          rnd((Ce, H, 1)), rnd((Ce,))))    # Conv1d(H->Ce, k=1)
    pt["ct1_w"] = rnd((embedding_dim, num_hiddens, 3))     # ConvTranspose1d
    pt["ct1_b"] = rnd((num_hiddens,))
    pt["ct2_w"] = rnd((num_hiddens, num_hiddens // 2, 5))
    pt["ct2_b"] = rnd((num_hiddens // 2,))
    pt["cf_w"] = rnd((output_channels, num_hiddens // 2, 7))  # Conv1d
    pt["cf_b"] = rnd((output_channels,))
    return pt


# ---------------------------------------------------------------------------
# Pure-JAX reference (standard zero-stuff formulation) for verification
# ---------------------------------------------------------------------------
def reference_forward(x_ncl, pt):
    hi = jax.lax.Precision.HIGHEST

    def conv1d(x, w, b, pad):                   # w: (Cout, Cin, K)
        K = w.shape[2]
        L_out = x.shape[2] + 2 * pad - K + 1
        xp = jnp.pad(x, ((0, 0), (0, 0), (pad, pad)))
        acc = b[None, :, None]
        for k in range(K):
            acc = acc + jnp.einsum("oc,bcl->bol", w[:, :, k],
                                   xp[:, :, k:k + L_out], precision=hi)
        return acc

    def convT1d(x, w, b, stride, pad, opad):    # w: (Cin, Cout, K)
        B, Cin, L = x.shape
        K = w.shape[2]
        up = jnp.zeros((B, Cin, (L - 1) * stride + 1), x.dtype)
        up = up.at[:, :, ::stride].set(x)
        xp = jnp.pad(up, ((0, 0), (0, 0),
                          (K - 1 - pad, K - 1 - pad + opad)))
        wf = jnp.flip(w, axis=2)
        L_out = (L - 1) * stride - 2 * pad + K + opad
        acc = b[None, :, None]
        for k in range(K):
            acc = acc + jnp.einsum("co,bcl->bol", wf[:, :, k],
                                   xp[:, :, k:k + L_out], precision=hi)
        return acc

    x = x_ncl
    for (w1, b1, w2, b2) in pt["res"]:
        h = jax.nn.relu(conv1d(jax.nn.relu(x), w1, b1, pad=1))
        x = x + conv1d(h, w2, b2, pad=0)
    x = jax.nn.relu(convT1d(x, pt["ct1_w"], pt["ct1_b"], 2, 1, 1))
    x = jax.nn.relu(convT1d(x, pt["ct2_w"], pt["ct2_b"], 2, 2, 1))
    x = conv1d(x, pt["cf_w"], pt["cf_b"], pad=3)
    return x


# ---------------------------------------------------------------------------
# Demo
# ---------------------------------------------------------------------------
if __name__ == "__main__":
    embedding_dim = 32
    num_hiddens = 32
    num_residual_layers = 2
    num_residual_hiddens = 16
    output_channels = 4
    B, L = 2, 8                       # small latent sequence, NCL = (2, 32, 8)

    key = jax.random.PRNGKey(0)
    k_x, k_p = jax.random.split(key)

    x_ncl = jax.random.normal(k_x, (B, embedding_dim, L), jnp.float32)
    pt_params = init_pt_params(k_p, embedding_dim, num_hiddens,
                               num_residual_layers, num_residual_hiddens,
                               output_channels)
    params = pack_params(pt_params)

    out = calcium_decoder_forward(x_ncl, params)       # (B, Cout, 4*L), NCL
    out = jax.block_until_ready(out)

    assert out.shape == (B, output_channels, 4 * L), out.shape
    assert out.dtype == jnp.float32

    # Verify against a plain-JAX reference of the same forward pass.
    ref = reference_forward(x_ncl, pt_params)
    max_err = float(jnp.max(jnp.abs(out - ref)))
    assert max_err < 5e-2, f"kernel/reference mismatch: {max_err}"

    print("KERNEL_OK")
</pallas_src>

<mosaic_0001>
module attributes {stable_mosaic.version = 11 : i64} {
  func.func @_decoder_kernel(%arg0: i32, %arg1: memref<1x32x128xf32, #tpu.memory_space<vmem>>, %arg2: memref<2x16x96xf32, #tpu.memory_space<vmem>>, %arg3: memref<2x16x1xf32, #tpu.memory_space<vmem>>, %arg4: memref<2x32x16xf32, #tpu.memory_space<vmem>>, %arg5: memref<2x32x1xf32, #tpu.memory_space<vmem>>, %arg6: memref<3x32x32xf32, #tpu.memory_space<vmem>>, %arg7: memref<32x1xf32, #tpu.memory_space<vmem>>, %arg8: memref<5x16x32xf32, #tpu.memory_space<vmem>>, %arg9: memref<16x1xf32, #tpu.memory_space<vmem>>, %arg10: memref<4x112xf32, #tpu.memory_space<vmem>>, %arg11: memref<4x1xf32, #tpu.memory_space<vmem>>, %arg12: memref<1x4x4x128xf32, #tpu.memory_space<vmem>>) attributes {dimension_semantics = [#tpu.dimension_semantics<parallel>], iteration_bounds = array<i64: 2>, scalar_prefetch = 0 : i64, scratch_operands = 0 : i64, tpu.core_type = #tpu.core_type<tc>, window_params = [{transform_indices = @transform_0, window_bounds = array<i64: 1, 32, 128>}, {pipeline_mode = #tpu.pipeline_mode<synchronous>, transform_indices = @transform_1, window_bounds = array<i64: 2, 16, 96>}, {pipeline_mode = #tpu.pipeline_mode<synchronous>, transform_indices = @transform_2, window_bounds = array<i64: 2, 16, 1>}, {pipeline_mode = #tpu.pipeline_mode<synchronous>, transform_indices = @transform_3, window_bounds = array<i64: 2, 32, 16>}, {pipeline_mode = #tpu.pipeline_mode<synchronous>, transform_indices = @transform_4, window_bounds = array<i64: 2, 32, 1>}, {pipeline_mode = #tpu.pipeline_mode<synchronous>, transform_indices = @transform_5, window_bounds = array<i64: 3, 32, 32>}, {pipeline_mode = #tpu.pipeline_mode<synchronous>, transform_indices = @transform_6, window_bounds = array<i64: 32, 1>}, {pipeline_mode = #tpu.pipeline_mode<synchronous>, transform_indices = @transform_7, window_bounds = array<i64: 5, 16, 32>}, {pipeline_mode = #tpu.pipeline_mode<synchronous>, transform_indices = @transform_8, window_bounds = array<i64: 16, 1>}, {pipeline_mode = #tpu.pipeline_mode<synchronous>, transform_indices = @transform_9, window_bounds = array<i64: 4, 112>}, {pipeline_mode = #tpu.pipeline_mode<synchronous>, transform_indices = @transform_10, window_bounds = array<i64: 4, 1>}, {transform_indices = @transform_11, window_bounds = array<i64: 1, 4, 4, 128>}]} {
    %c0 = arith.constant 0 : index
    %c0_0 = arith.constant 0 : index
    %c0_1 = arith.constant 0 : index
    %0 = vector.load %arg1[%c0, %c0_0, %c0_1] : memref<1x32x128xf32, #tpu.memory_space<vmem>>, vector<1x32x128xf32>
    %1 = vector.shape_cast %0 : vector<1x32x128xf32> to vector<32x128xf32>
    %2 = tpu.iota {dimensions = array<i32: 1>} : vector<1x128xi32>
    %c8_i32 = arith.constant 8 : i32
    %3 = vector.broadcast %c8_i32 : i32 to vector<1x128xi32>
    %4 = arith.cmpi slt, %2, %3 : vector<1x128xi32>
    %5 = arith.extui %4 : vector<1x128xi1> to vector<1x128xi32>
    %6 = arith.sitofp %5 : vector<1x128xi32> to vector<1x128xf32>
    %cst = arith.constant 0.000000e+00 : f32
    %7 = vector.broadcast %cst : f32 to vector<32x128xf32>
    %8 = arith.maximumf %1, %7 : vector<32x128xf32>
    %cst_2 = arith.constant 0.000000e+00 : f32
    %9 = vector.broadcast %cst_2 : f32 to vector<32x128xf32>
    %10 = tpu.concatenate %9, %8 in 1 : vector<32x128xf32>, vector<32x128xf32> -> vector<32x256xf32>
    %11 = vector.extract_strided_slice %10 {offsets = [0, 127], sizes = [32, 128], strides = [1, 1]} : vector<32x256xf32> to vector<32x128xf32>
    %cst_3 = arith.constant 0.000000e+00 : f32
    %12 = vector.broadcast %cst_3 : f32 to vector<32x128xf32>
    %13 = tpu.concatenate %8, %12 in 1 : vector<32x128xf32>, vector<32x128xf32> -> vector<32x256xf32>
    %14 = vector.extract_strided_slice %13 {offsets = [0, 1], sizes = [32, 128], strides = [1, 1]} : vector<32x256xf32> to vector<32x128xf32>
    %15 = tpu.concatenate %11, %8, %14 in 0 : vector<32x128xf32>, vector<32x128xf32>, vector<32x128xf32> -> vector<96x128xf32>
    %c0_4 = arith.constant 0 : index
    %c0_5 = arith.constant 0 : index
    %c0_6 = arith.constant 0 : index
    %16 = vector.load %arg2[%c0_4, %c0_5, %c0_6] : memref<2x16x96xf32, #tpu.memory_space<vmem>>, vector<1x16x96xf32>
    %17 = vector.shape_cast %16 : vector<1x16x96xf32> to vector<16x96xf32>
    %cst_7 = arith.constant dense<0.000000e+00> : vector<16x128xf32>
    %18 = tpu.matmul %17, %15, %cst_7 {dimension_numbers = #tpu.dot_dimension_numbers<[1], [0], [0], [1], [0, 0, 1, 1], [], []>} : vector<16x96xf32>, vector<96x128xf32>, vector<16x128xf32> -> vector<16x128xf32>
    %c0_8 = arith.constant 0 : index
    %c0_9 = arith.constant 0 : index
    %c0_10 = arith.constant 0 : index
    %19 = vector.load %arg3[%c0_8, %c0_9, %c0_10] : memref<2x16x1xf32, #tpu.memory_space<vmem>>, vector<1x16x1xf32>
    %20 = vector.shape_cast %19 : vector<1x16x1xf32> to vector<16x1xf32>
    %21 = vector.broadcast %20 : vector<16x1xf32> to vector<16x128xf32>
    %22 = arith.addf %18, %21 : vector<16x128xf32>
    %cst_11 = arith.constant 0.000000e+00 : f32
    %23 = vector.broadcast %cst_11 : f32 to vector<16x128xf32>
    %24 = arith.maximumf %22, %23 : vector<16x128xf32>
    %c0_12 = arith.constant 0 : index
    %c0_13 = arith.constant 0 : index
    %c0_14 = arith.constant 0 : index
    %25 = vector.load %arg4[%c0_12, %c0_13, %c0_14] : memref<2x32x16xf32, #tpu.memory_space<vmem>>, vector<1x32x16xf32>
    %26 = vector.shape_cast %25 : vector<1x32x16xf32> to vector<32x16xf32>
    %cst_15 = arith.constant dense<0.000000e+00> : vector<32x128xf32>
    %27 = tpu.matmul %26, %24, %cst_15 {dimension_numbers = #tpu.dot_dimension_numbers<[1], [0], [0], [1], [0, 0, 1, 1], [], []>} : vector<32x16xf32>, vector<16x128xf32>, vector<32x128xf32> -> vector<32x128xf32>
    %28 = arith.addf %1, %27 : vector<32x128xf32>
    %c0_16 = arith.constant 0 : index
    %c0_17 = arith.constant 0 : index
    %c0_18 = arith.constant 0 : index
    %29 = vector.load %arg5[%c0_16, %c0_17, %c0_18] : memref<2x32x1xf32, #tpu.memory_space<vmem>>, vector<1x32x1xf32>
    %30 = vector.shape_cast %29 : vector<1x32x1xf32> to vector<32x1xf32>
    %31 = vector.broadcast %30 : vector<32x1xf32> to vector<32x128xf32>
    %32 = arith.addf %28, %31 : vector<32x128xf32>
    %33 = vector.broadcast %6 : vector<1x128xf32> to vector<32x128xf32>
    %34 = arith.mulf %32, %33 : vector<32x128xf32>
    %cst_19 = arith.constant 0.000000e+00 : f32
    %35 = vector.broadcast %cst_19 : f32 to vector<32x128xf32>
    %36 = arith.maximumf %34, %35 : vector<32x128xf32>
    %cst_20 = arith.constant 0.000000e+00 : f32
    %37 = vector.broadcast %cst_20 : f32 to vector<32x128xf32>
    %38 = tpu.concatenate %37, %36 in 1 : vector<32x128xf32>, vector<32x128xf32> -> vector<32x256xf32>
    %39 = vector.extract_strided_slice %38 {offsets = [0, 127], sizes = [32, 128], strides = [1, 1]} : vector<32x256xf32> to vector<32x128xf32>
    %cst_21 = arith.constant 0.000000e+00 : f32
    %40 = vector.broadcast %cst_21 : f32 to vector<32x128xf32>
    %41 = tpu.concatenate %36, %40 in 1 : vector<32x128xf32>, vector<32x128xf32> -> vector<32x256xf32>
    %42 = vector.extract_strided_slice %41 {offsets = [0, 1], sizes = [32, 128], strides = [1, 1]} : vector<32x256xf32> to vector<32x128xf32>
    %43 = tpu.concatenate %39, %36, %42 in 0 : vector<32x128xf32>, vector<32x128xf32>, vector<32x128xf32> -> vector<96x128xf32>
    %c1 = arith.constant 1 : index
    %c0_22 = arith.constant 0 : index
    %c0_23 = arith.constant 0 : index
    %44 = vector.load %arg2[%c1, %c0_22, %c0_23] : memref<2x16x96xf32, #tpu.memory_space<vmem>>, vector<1x16x96xf32>
    %45 = vector.shape_cast %44 : vector<1x16x96xf32> to vector<16x96xf32>
    %cst_24 = arith.constant dense<0.000000e+00> : vector<16x128xf32>
    %46 = tpu.matmul %45, %43, %cst_24 {dimension_numbers = #tpu.dot_dimension_numbers<[1], [0], [0], [1], [0, 0, 1, 1], [], []>} : vector<16x96xf32>, vector<96x128xf32>, vector<16x128xf32> -> vector<16x128xf32>
    %c1_25 = arith.constant 1 : index
    %c0_26 = arith.constant 0 : index
    %c0_27 = arith.constant 0 : index
    %47 = vector.load %arg3[%c1_25, %c0_26, %c0_27] : memref<2x16x1xf32, #tpu.memory_space<vmem>>, vector<1x16x1xf32>
    %48 = vector.shape_cast %47 : vector<1x16x1xf32> to vector<16x1xf32>
    %49 = vector.broadcast %48 : vector<16x1xf32> to vector<16x128xf32>
    %50 = arith.addf %46, %49 : vector<16x128xf32>
    %cst_28 = arith.constant 0.000000e+00 : f32
    %51 = vector.broadcast %cst_28 : f32 to vector<16x128xf32>
    %52 = arith.maximumf %50, %51 : vector<16x128xf32>
    %c1_29 = arith.constant 1 : index
    %c0_30 = arith.constant 0 : index
    %c0_31 = arith.constant 0 : index
    %53 = vector.load %arg4[%c1_29, %c0_30, %c0_31] : memref<2x32x16xf32, #tpu.memory_space<vmem>>, vector<1x32x16xf32>
    %54 = vector.shape_cast %53 : vector<1x32x16xf32> to vector<32x16xf32>
    %cst_32 = arith.constant dense<0.000000e+00> : vector<32x128xf32>
    %55 = tpu.matmul %54, %52, %cst_32 {dimension_numbers = #tpu.dot_dimension_numbers<[1], [0], [0], [1], [0, 0, 1, 1], [], []>} : vector<32x16xf32>, vector<16x128xf32>, vector<32x128xf32> -> vector<32x128xf32>
    %56 = arith.addf %34, %55 : vector<32x128xf32>
    %c1_33 = arith.constant 1 : index
    %c0_34 = arith.constant 0 : index
    %c0_35 = arith.constant 0 : index
    %57 = vector.load %arg5[%c1_33, %c0_34, %c0_35] : memref<2x32x1xf32, #tpu.memory_space<vmem>>, vector<1x32x1xf32>
    %58 = vector.shape_cast %57 : vector<1x32x1xf32> to vector<32x1xf32>
    %59 = vector.broadcast %58 : vector<32x1xf32> to vector<32x128xf32>
    %60 = arith.addf %56, %59 : vector<32x128xf32>
    %61 = vector.broadcast %6 : vector<1x128xf32> to vector<32x128xf32>
    %62 = arith.mulf %60, %61 : vector<32x128xf32>
    %c0_36 = arith.constant 0 : index
    %c0_37 = arith.constant 0 : index
    %63 = vector.load %arg7[%c0_36, %c0_37] : memref<32x1xf32, #tpu.memory_space<vmem>>, vector<32x1xf32>
    %c1_38 = arith.constant 1 : index
    %c0_39 = arith.constant 0 : index
    %c0_40 = arith.constant 0 : index
    %64 = vector.load %arg6[%c1_38, %c0_39, %c0_40] : memref<3x32x32xf32, #tpu.memory_space<vmem>>, vector<1x32x32xf32>
    %65 = vector.shape_cast %64 : vector<1x32x32xf32> to vector<32x32xf32>
    %cst_41 = arith.constant dense<0.000000e+00> : vector<32x128xf32>
    %66 = tpu.matmul %65, %62, %cst_41 {dimension_numbers = #tpu.dot_dimension_numbers<[1], [0], [0], [1], [0, 0, 1, 1], [], []>} : vector<32x32xf32>, vector<32x128xf32>, vector<32x128xf32> -> vector<32x128xf32>
    %67 = vector.broadcast %63 : vector<32x1xf32> to vector<32x128xf32>
    %68 = arith.addf %66, %67 : vector<32x128xf32>
    %cst_42 = arith.constant 0.000000e+00 : f32
    %69 = vector.broadcast %cst_42 : f32 to vector<32x128xf32>
    %70 = arith.maximumf %68, %69 : vector<32x128xf32>
    %71 = vector.broadcast %6 : vector<1x128xf32> to vector<32x128xf32>
    %72 = arith.mulf %70, %71 : vector<32x128xf32>
    %c0_43 = arith.constant 0 : index
    %c0_44 = arith.constant 0 : index
    %c0_45 = arith.constant 0 : index
    %73 = vector.load %arg6[%c0_43, %c0_44, %c0_45] : memref<3x32x32xf32, #tpu.memory_space<vmem>>, vector<1x32x32xf32>
    %74 = vector.shape_cast %73 : vector<1x32x32xf32> to vector<32x32xf32>
    %cst_46 = arith.constant 0.000000e+00 : f32
    %75 = vector.broadcast %cst_46 : f32 to vector<32x128xf32>
    %76 = tpu.concatenate %62, %75 in 1 : vector<32x128xf32>, vector<32x128xf32> -> vector<32x256xf32>
    %77 = vector.extract_strided_slice %76 {offsets = [0, 1], sizes = [32, 128], strides = [1, 1]} : vector<32x256xf32> to vector<32x128xf32>
    %cst_47 = arith.constant dense<0.000000e+00> : vector<32x128xf32>
    %78 = tpu.matmul %74, %77, %cst_47 {dimension_numbers = #tpu.dot_dimension_numbers<[1], [0], [0], [1], [0, 0, 1, 1], [], []>} : vector<32x32xf32>, vector<32x128xf32>, vector<32x128xf32> -> vector<32x128xf32>
    %c2 = arith.constant 2 : index
    %c0_48 = arith.constant 0 : index
    %c0_49 = arith.constant 0 : index
    %79 = vector.load %arg6[%c2, %c0_48, %c0_49] : memref<3x32x32xf32, #tpu.memory_space<vmem>>, vector<1x32x32xf32>
    %80 = vector.shape_cast %79 : vector<1x32x32xf32> to vector<32x32xf32>
    %cst_50 = arith.constant dense<0.000000e+00> : vector<32x128xf32>
    %81 = tpu.matmul %80, %62, %cst_50 {dimension_numbers = #tpu.dot_dimension_numbers<[1], [0], [0], [1], [0, 0, 1, 1], [], []>} : vector<32x32xf32>, vector<32x128xf32>, vector<32x128xf32> -> vector<32x128xf32>
    %82 = arith.addf %78, %81 : vector<32x128xf32>
    %83 = vector.broadcast %63 : vector<32x1xf32> to vector<32x128xf32>
    %84 = arith.addf %82, %83 : vector<32x128xf32>
    %cst_51 = arith.constant 0.000000e+00 : f32
    %85 = vector.broadcast %cst_51 : f32 to vector<32x128xf32>
    %86 = arith.maximumf %84, %85 : vector<32x128xf32>
    %87 = vector.broadcast %6 : vector<1x128xf32> to vector<32x128xf32>
    %88 = arith.mulf %86, %87 : vector<32x128xf32>
    %c0_52 = arith.constant 0 : index
    %c0_53 = arith.constant 0 : index
    %89 = vector.load %arg9[%c0_52, %c0_53] : memref<16x1xf32, #tpu.memory_space<vmem>>, vector<16x1xf32>
    %cst_54 = arith.constant 0.000000e+00 : f32
    %90 = vector.broadcast %cst_54 : f32 to vector<32x128xf32>
    %91 = tpu.concatenate %72, %90 in 1 : vector<32x128xf32>, vector<32x128xf32> -> vector<32x256xf32>
    %92 = vector.extract_strided_slice %91 {offsets = [0, 1], sizes = [32, 128], strides = [1, 1]} : vector<32x256xf32> to vector<32x128xf32>
    %cst_55 = arith.constant 0.000000e+00 : f32
    %93 = vector.broadcast %cst_55 : f32 to vector<32x128xf32>
    %94 = tpu.concatenate %93, %88 in 1 : vector<32x128xf32>, vector<32x128xf32> -> vector<32x256xf32>
    %95 = vector.extract_strided_slice %94 {offsets = [0, 127], sizes = [32, 128], strides = [1, 1]} : vector<32x256xf32> to vector<32x128xf32>
    %c0_56 = arith.constant 0 : index
    %c0_57 = arith.constant 0 : index
    %c0_58 = arith.constant 0 : index
    %96 = vector.load %arg8[%c0_56, %c0_57, %c0_58] : memref<5x16x32xf32, #tpu.memory_space<vmem>>, vector<1x16x32xf32>
    %97 = vector.shape_cast %96 : vector<1x16x32xf32> to vector<16x32xf32>
    %cst_59 = arith.constant dense<0.000000e+00> : vector<16x128xf32>
    %98 = tpu.matmul %97, %88, %cst_59 {dimension_numbers = #tpu.dot_dimension_numbers<[1], [0], [0], [1], [0, 0, 1, 1], [], []>} : vector<16x32xf32>, vector<32x128xf32>, vector<16x128xf32> -> vector<16x128xf32>
    %c2_60 = arith.constant 2 : index
    %c0_61 = arith.constant 0 : index
    %c0_62 = arith.constant 0 : index
    %99 = vector.load %arg8[%c2_60, %c0_61, %c0_62] : memref<5x16x32xf32, #tpu.memory_space<vmem>>, vector<1x16x32xf32>
    %100 = vector.shape_cast %99 : vector<1x16x32xf32> to vector<16x32xf32>
    %cst_63 = arith.constant dense<0.000000e+00> : vector<16x128xf32>
    %101 = tpu.matmul %100, %72, %cst_63 {dimension_numbers = #tpu.dot_dimension_numbers<[1], [0], [0], [1], [0, 0, 1, 1], [], []>} : vector<16x32xf32>, vector<32x128xf32>, vector<16x128xf32> -> vector<16x128xf32>
    %102 = arith.addf %98, %101 : vector<16x128xf32>
    %c4 = arith.constant 4 : index
    %c0_64 = arith.constant 0 : index
    %c0_65 = arith.constant 0 : index
    %103 = vector.load %arg8[%c4, %c0_64, %c0_65] : memref<5x16x32xf32, #tpu.memory_space<vmem>>, vector<1x16x32xf32>
    %104 = vector.shape_cast %103 : vector<1x16x32xf32> to vector<16x32xf32>
    %cst_66 = arith.constant dense<0.000000e+00> : vector<16x128xf32>
    %105 = tpu.matmul %104, %95, %cst_66 {dimension_numbers = #tpu.dot_dimension_numbers<[1], [0], [0], [1], [0, 0, 1, 1], [], []>} : vector<16x32xf32>, vector<32x128xf32>, vector<16x128xf32> -> vector<16x128xf32>
    %106 = arith.addf %102, %105 : vector<16x128xf32>
    %107 = vector.broadcast %89 : vector<16x1xf32> to vector<16x128xf32>
    %108 = arith.addf %106, %107 : vector<16x128xf32>
    %c1_67 = arith.constant 1 : index
    %c0_68 = arith.constant 0 : index
    %c0_69 = arith.constant 0 : index
    %109 = vector.load %arg8[%c1_67, %c0_68, %c0_69] : memref<5x16x32xf32, #tpu.memory_space<vmem>>, vector<1x16x32xf32>
    %110 = vector.shape_cast %109 : vector<1x16x32xf32> to vector<16x32xf32>
    %cst_70 = arith.constant dense<0.000000e+00> : vector<16x128xf32>
    %111 = tpu.matmul %110, %88, %cst_70 {dimension_numbers = #tpu.dot_dimension_numbers<[1], [0], [0], [1], [0, 0, 1, 1], [], []>} : vector<16x32xf32>, vector<32x128xf32>, vector<16x128xf32> -> vector<16x128xf32>
    %c3 = arith.constant 3 : index
    %c0_71 = arith.constant 0 : index
    %c0_72 = arith.constant 0 : index
    %112 = vector.load %arg8[%c3, %c0_71, %c0_72] : memref<5x16x32xf32, #tpu.memory_space<vmem>>, vector<1x16x32xf32>
    %113 = vector.shape_cast %112 : vector<1x16x32xf32> to vector<16x32xf32>
    %cst_73 = arith.constant dense<0.000000e+00> : vector<16x128xf32>
    %114 = tpu.matmul %113, %72, %cst_73 {dimension_numbers = #tpu.dot_dimension_numbers<[1], [0], [0], [1], [0, 0, 1, 1], [], []>} : vector<16x32xf32>, vector<32x128xf32>, vector<16x128xf32> -> vector<16x128xf32>
    %115 = arith.addf %111, %114 : vector<16x128xf32>
    %116 = vector.broadcast %89 : vector<16x1xf32> to vector<16x128xf32>
    %117 = arith.addf %115, %116 : vector<16x128xf32>
    %c0_74 = arith.constant 0 : index
    %c0_75 = arith.constant 0 : index
    %c0_76 = arith.constant 0 : index
    %118 = vector.load %arg8[%c0_74, %c0_75, %c0_76] : memref<5x16x32xf32, #tpu.memory_space<vmem>>, vector<1x16x32xf32>
    %119 = vector.shape_cast %118 : vector<1x16x32xf32> to vector<16x32xf32>
    %cst_77 = arith.constant dense<0.000000e+00> : vector<16x128xf32>
    %120 = tpu.matmul %119, %92, %cst_77 {dimension_numbers = #tpu.dot_dimension_numbers<[1], [0], [0], [1], [0, 0, 1, 1], [], []>} : vector<16x32xf32>, vector<32x128xf32>, vector<16x128xf32> -> vector<16x128xf32>
    %c2_78 = arith.constant 2 : index
    %c0_79 = arith.constant 0 : index
    %c0_80 = arith.constant 0 : index
    %121 = vector.load %arg8[%c2_78, %c0_79, %c0_80] : memref<5x16x32xf32, #tpu.memory_space<vmem>>, vector<1x16x32xf32>
    %122 = vector.shape_cast %121 : vector<1x16x32xf32> to vector<16x32xf32>
    %cst_81 = arith.constant dense<0.000000e+00> : vector<16x128xf32>
    %123 = tpu.matmul %122, %88, %cst_81 {dimension_numbers = #tpu.dot_dimension_numbers<[1], [0], [0], [1], [0, 0, 1, 1], [], []>} : vector<16x32xf32>, vector<32x128xf32>, vector<16x128xf32> -> vector<16x128xf32>
    %124 = arith.addf %120, %123 : vector<16x128xf32>
    %c4_82 = arith.constant 4 : index
    %c0_83 = arith.constant 0 : index
    %c0_84 = arith.constant 0 : index
    %125 = vector.load %arg8[%c4_82, %c0_83, %c0_84] : memref<5x16x32xf32, #tpu.memory_space<vmem>>, vector<1x16x32xf32>
    %126 = vector.shape_cast %125 : vector<1x16x32xf32> to vector<16x32xf32>
    %cst_85 = arith.constant dense<0.000000e+00> : vector<16x128xf32>
    %127 = tpu.matmul %126, %72, %cst_85 {dimension_numbers = #tpu.dot_dimension_numbers<[1], [0], [0], [1], [0, 0, 1, 1], [], []>} : vector<16x32xf32>, vector<32x128xf32>, vector<16x128xf32> -> vector<16x128xf32>
    %128 = arith.addf %124, %127 : vector<16x128xf32>
    %129 = vector.broadcast %89 : vector<16x1xf32> to vector<16x128xf32>
    %130 = arith.addf %128, %129 : vector<16x128xf32>
    %c1_86 = arith.constant 1 : index
    %c0_87 = arith.constant 0 : index
    %c0_88 = arith.constant 0 : index
    %131 = vector.load %arg8[%c1_86, %c0_87, %c0_88] : memref<5x16x32xf32, #tpu.memory_space<vmem>>, vector<1x16x32xf32>
    %132 = vector.shape_cast %131 : vector<1x16x32xf32> to vector<16x32xf32>
    %cst_89 = arith.constant dense<0.000000e+00> : vector<16x128xf32>
    %133 = tpu.matmul %132, %92, %cst_89 {dimension_numbers = #tpu.dot_dimension_numbers<[1], [0], [0], [1], [0, 0, 1, 1], [], []>} : vector<16x32xf32>, vector<32x128xf32>, vector<16x128xf32> -> vector<16x128xf32>
    %c3_90 = arith.constant 3 : index
    %c0_91 = arith.constant 0 : index
    %c0_92 = arith.constant 0 : index
    %134 = vector.load %arg8[%c3_90, %c0_91, %c0_92] : memref<5x16x32xf32, #tpu.memory_space<vmem>>, vector<1x16x32xf32>
    %135 = vector.shape_cast %134 : vector<1x16x32xf32> to vector<16x32xf32>
    %cst_93 = arith.constant dense<0.000000e+00> : vector<16x128xf32>
    %136 = tpu.matmul %135, %88, %cst_93 {dimension_numbers = #tpu.dot_dimension_numbers<[1], [0], [0], [1], [0, 0, 1, 1], [], []>} : vector<16x32xf32>, vector<32x128xf32>, vector<16x128xf32> -> vector<16x128xf32>
    %137 = arith.addf %133, %136 : vector<16x128xf32>
    %138 = vector.broadcast %89 : vector<16x1xf32> to vector<16x128xf32>
    %139 = arith.addf %137, %138 : vector<16x128xf32>
    %cst_94 = arith.constant 0.000000e+00 : f32
    %140 = vector.broadcast %cst_94 : f32 to vector<16x128xf32>
    %141 = arith.maximumf %108, %140 : vector<16x128xf32>
    %142 = vector.broadcast %6 : vector<1x128xf32> to vector<16x128xf32>
    %143 = arith.mulf %141, %142 : vector<16x128xf32>
    %cst_95 = arith.constant 0.000000e+00 : f32
    %144 = vector.broadcast %cst_95 : f32 to vector<16x128xf32>
    %145 = arith.maximumf %117, %144 : vector<16x128xf32>
    %146 = vector.broadcast %6 : vector<1x128xf32> to vector<16x128xf32>
    %147 = arith.mulf %145, %146 : vector<16x128xf32>
    %cst_96 = arith.constant 0.000000e+00 : f32
    %148 = vector.broadcast %cst_96 : f32 to vector<16x128xf32>
    %149 = arith.maximumf %130, %148 : vector<16x128xf32>
    %150 = vector.broadcast %6 : vector<1x128xf32> to vector<16x128xf32>
    %151 = arith.mulf %149, %150 : vector<16x128xf32>
    %cst_97 = arith.constant 0.000000e+00 : f32
    %152 = vector.broadcast %cst_97 : f32 to vector<16x128xf32>
    %153 = arith.maximumf %139, %152 : vector<16x128xf32>
    %154 = vector.broadcast %6 : vector<1x128xf32> to vector<16x128xf32>
    %155 = arith.mulf %153, %154 : vector<16x128xf32>
    %c0_98 = arith.constant 0 : index
    %c0_99 = arith.constant 0 : index
    %156 = vector.load %arg11[%c0_98, %c0_99] : memref<4x1xf32, #tpu.memory_space<vmem>>, vector<4x1xf32>
    %c0_100 = arith.constant 0 : index
    %c0_101 = arith.constant 0 : index
    %157 = vector.load %arg10[%c0_100, %c0_101] : memref<4x112xf32, #tpu.memory_space<vmem>>, vector<4x112xf32>
    %cst_102 = arith.constant 0.000000e+00 : f32
    %158 = vector.broadcast %cst_102 : f32 to vector<16x128xf32>
    %159 = tpu.concatenate %158, %147 in 1 : vector<16x128xf32>, vector<16x128xf32> -> vector<16x256xf32>
    %160 = vector.extract_strided_slice %159 {offsets = [0, 127], sizes = [16, 128], strides = [1, 1]} : vector<16x256xf32> to vector<16x128xf32>
    %cst_103 = arith.constant 0.000000e+00 : f32
    %161 = vector.broadcast %cst_103 : f32 to vector<16x128xf32>
    %162 = tpu.concatenate %161, %151 in 1 : vector<16x128xf32>, vector<16x128xf32> -> vector<16x256xf32>
    %163 = vector.extract_strided_slice %162 {offsets = [0, 127], sizes = [16, 128], strides = [1, 1]} : vector<16x256xf32> to vector<16x128xf32>
    %cst_104 = arith.constant 0.000000e+00 : f32
    %164 = vector.broadcast %cst_104 : f32 to vector<16x128xf32>
    %165 = tpu.concatenate %164, %155 in 1 : vector<16x128xf32>, vector<16x128xf32> -> vector<16x256xf32>
    %166 = vector.extract_strided_slice %165 {offsets = [0, 127], sizes = [16, 128], strides = [1, 1]} : vector<16x256xf32> to vector<16x128xf32>
    %cst_105 = arith.constant 0.000000e+00 : f32
    %167 = vector.broadcast %cst_105 : f32 to vector<16x128xf32>
    %168 = tpu.concatenate %143, %167 in 1 : vector<16x128xf32>, vector<16x128xf32> -> vector<16x256xf32>
    %169 = vector.extract_strided_slice %168 {offsets = [0, 1], sizes = [16, 128], strides = [1, 1]} : vector<16x256xf32> to vector<16x128xf32>
    %cst_106 = arith.constant 0.000000e+00 : f32
    %170 = vector.broadcast %cst_106 : f32 to vector<16x128xf32>
    %171 = tpu.concatenate %147, %170 in 1 : vector<16x128xf32>, vector<16x128xf32> -> vector<16x256xf32>
    %172 = vector.extract_strided_slice %171 {offsets = [0, 1], sizes = [16, 128], strides = [1, 1]} : vector<16x256xf32> to vector<16x128xf32>
    %cst_107 = arith.constant 0.000000e+00 : f32
    %173 = vector.broadcast %cst_107 : f32 to vector<16x128xf32>
    %174 = tpu.concatenate %151, %173 in 1 : vector<16x128xf32>, vector<16x128xf32> -> vector<16x256xf32>
    %175 = vector.extract_strided_slice %174 {offsets = [0, 1], sizes = [16, 128], strides = [1, 1]} : vector<16x256xf32> to vector<16x128xf32>
    %176 = tpu.concatenate %160, %163, %166, %143, %147, %151, %155 in 0 : vector<16x128xf32>, vector<16x128xf32>, vector<16x128xf32>, vector<16x128xf32>, vector<16x128xf32>, vector<16x128xf32>, vector<16x128xf32> -> vector<112x128xf32>
    %cst_108 = arith.constant dense<0.000000e+00> : vector<4x128xf32>
    %177 = tpu.matmul %157, %176, %cst_108 {dimension_numbers = #tpu.dot_dimension_numbers<[1], [0], [0], [1], [0, 0, 1, 1], [], []>} : vector<4x112xf32>, vector<112x128xf32>, vector<4x128xf32> -> vector<4x128xf32>
    %178 = vector.broadcast %156 : vector<4x1xf32> to vector<4x128xf32>
    %179 = arith.addf %177, %178 : vector<4x128xf32>
    %c0_109 = arith.constant 0 : index
    %c0_110 = arith.constant 0 : index
    %c0_111 = arith.constant 0 : index
    %c0_112 = arith.constant 0 : index
    %180 = vector.load %arg12[%c0_109, %c0_110, %c0_111, %c0_112] : memref<1x4x4x128xf32, #tpu.memory_space<vmem>>, vector<1x1x4x128xf32>
    %181 = vector.shape_cast %180 : vector<1x1x4x128xf32> to vector<4x128xf32>
    %182 = vector.shape_cast %179 : vector<4x128xf32> to vector<1x1x4x128xf32>
    tpu.vector_store %arg12[%c0_109, %c0_110, %c0_111, %c0_112], %182 {strides = array<i32>} : memref<1x4x4x128xf32, #tpu.memory_space<vmem>>, vector<1x1x4x128xf32>,
    %183 = tpu.concatenate %163, %166, %143, %147, %151, %155, %169 in 0 : vector<16x128xf32>, vector<16x128xf32>, vector<16x128xf32>, vector<16x128xf32>, vector<16x128xf32>, vector<16x128xf32>, vector<16x128xf32> -> vector<112x128xf32>
    %cst_113 = arith.constant dense<0.000000e+00> : vector<4x128xf32>
    %184 = tpu.matmul %157, %183, %cst_113 {dimension_numbers = #tpu.dot_dimension_numbers<[1], [0], [0], [1], [0, 0, 1, 1], [], []>} : vector<4x112xf32>, vector<112x128xf32>, vector<4x128xf32> -> vector<4x128xf32>
    %185 = vector.broadcast %156 : vector<4x1xf32> to vector<4x128xf32>
    %186 = arith.addf %184, %185 : vector<4x128xf32>
    %c0_114 = arith.constant 0 : index
    %c1_115 = arith.constant 1 : index
    %c0_116 = arith.constant 0 : index
    %c0_117 = arith.constant 0 : index
    %187 = vector.load %arg12[%c0_114, %c1_115, %c0_116, %c0_117] : memref<1x4x4x128xf32, #tpu.memory_space<vmem>>, vector<1x1x4x128xf32>
    %188 = vector.shape_cast %187 : vector<1x1x4x128xf32> to vector<4x128xf32>
    %189 = vector.shape_cast %186 : vector<4x128xf32> to vector<1x1x4x128xf32>
    tpu.vector_store %arg12[%c0_114, %c1_115, %c0_116, %c0_117], %189 {strides = array<i32>} : memref<1x4x4x128xf32, #tpu.memory_space<vmem>>, vector<1x1x4x128xf32>,
    %190 = tpu.concatenate %166, %143, %147, %151, %155, %169, %172 in 0 : vector<16x128xf32>, vector<16x128xf32>, vector<16x128xf32>, vector<16x128xf32>, vector<16x128xf32>, vector<16x128xf32>, vector<16x128xf32> -> vector<112x128xf32>
    %cst_118 = arith.constant dense<0.000000e+00> : vector<4x128xf32>
    %191 = tpu.matmul %157, %190, %cst_118 {dimension_numbers = #tpu.dot_dimension_numbers<[1], [0], [0], [1], [0, 0, 1, 1], [], []>} : vector<4x112xf32>, vector<112x128xf32>, vector<4x128xf32> -> vector<4x128xf32>
    %192 = vector.broadcast %156 : vector<4x1xf32> to vector<4x128xf32>
    %193 = arith.addf %191, %192 : vector<4x128xf32>
    %c0_119 = arith.constant 0 : index
    %c2_120 = arith.constant 2 : index
    %c0_121 = arith.constant 0 : index
    %c0_122 = arith.constant 0 : index
    %194 = vector.load %arg12[%c0_119, %c2_120, %c0_121, %c0_122] : memref<1x4x4x128xf32, #tpu.memory_space<vmem>>, vector<1x1x4x128xf32>
    %195 = vector.shape_cast %194 : vector<1x1x4x128xf32> to vector<4x128xf32>
    %196 = vector.shape_cast %193 : vector<4x128xf32> to vector<1x1x4x128xf32>
    tpu.vector_store %arg12[%c0_119, %c2_120, %c0_121, %c0_122], %196 {strides = array<i32>} : memref<1x4x4x128xf32, #tpu.memory_space<vmem>>, vector<1x1x4x128xf32>,
    %197 = tpu.concatenate %143, %147, %151, %155, %169, %172, %175 in 0 : vector<16x128xf32>, vector<16x128xf32>, vector<16x128xf32>, vector<16x128xf32>, vector<16x128xf32>, vector<16x128xf32>, vector<16x128xf32> -> vector<112x128xf32>
    %cst_123 = arith.constant dense<0.000000e+00> : vector<4x128xf32>
    %198 = tpu.matmul %157, %197, %cst_123 {dimension_numbers = #tpu.dot_dimension_numbers<[1], [0], [0], [1], [0, 0, 1, 1], [], []>} : vector<4x112xf32>, vector<112x128xf32>, vector<4x128xf32> -> vector<4x128xf32>
    %199 = vector.broadcast %156 : vector<4x1xf32> to vector<4x128xf32>
    %200 = arith.addf %198, %199 : vector<4x128xf32>
    %c0_124 = arith.constant 0 : index
    %c3_125 = arith.constant 3 : index
    %c0_126 = arith.constant 0 : index
    %c0_127 = arith.constant 0 : index
    %201 = vector.load %arg12[%c0_124, %c3_125, %c0_126, %c0_127] : memref<1x4x4x128xf32, #tpu.memory_space<vmem>>, vector<1x1x4x128xf32>
    %202 = vector.shape_cast %201 : vector<1x1x4x128xf32> to vector<4x128xf32>
    %203 = vector.shape_cast %200 : vector<4x128xf32> to vector<1x1x4x128xf32>
    tpu.vector_store %arg12[%c0_124, %c3_125, %c0_126, %c0_127], %203 {strides = array<i32>} : memref<1x4x4x128xf32, #tpu.memory_space<vmem>>, vector<1x1x4x128xf32>,
    return
  }
  func.func @transform_0(%arg0: i32) -> (i32, i32, i32) {
    %c0_i32 = arith.constant 0 : i32
    %c0_i32_0 = arith.constant 0 : i32
    %c0_i32_1 = arith.constant 0 : i32
    return %arg0, %c0_i32, %c0_i32_0 : i32, i32, i32
  }
  func.func @transform_1(%arg0: i32) -> (i32, i32, i32) {
    %c0_i32 = arith.constant 0 : i32
    %c0_i32_0 = arith.constant 0 : i32
    %c0_i32_1 = arith.constant 0 : i32
    %c0_i32_2 = arith.constant 0 : i32
    return %c0_i32, %c0_i32_0, %c0_i32_1 : i32, i32, i32
  }
  func.func @transform_2(%arg0: i32) -> (i32, i32, i32) {
    %c0_i32 = arith.constant 0 : i32
    %c0_i32_0 = arith.constant 0 : i32
    %c0_i32_1 = arith.constant 0 : i32
    %c0_i32_2 = arith.constant 0 : i32
    return %c0_i32, %c0_i32_0, %c0_i32_1 : i32, i32, i32
  }
  func.func @transform_3(%arg0: i32) -> (i32, i32, i32) {
    %c0_i32 = arith.constant 0 : i32
    %c0_i32_0 = arith.constant 0 : i32
    %c0_i32_1 = arith.constant 0 : i32
    %c0_i32_2 = arith.constant 0 : i32
    return %c0_i32, %c0_i32_0, %c0_i32_1 : i32, i32, i32
  }
  func.func @transform_4(%arg0: i32) -> (i32, i32, i32) {
    %c0_i32 = arith.constant 0 : i32
    %c0_i32_0 = arith.constant 0 : i32
    %c0_i32_1 = arith.constant 0 : i32
    %c0_i32_2 = arith.constant 0 : i32
    return %c0_i32, %c0_i32_0, %c0_i32_1 : i32, i32, i32
  }
  func.func @transform_5(%arg0: i32) -> (i32, i32, i32) {
    %c0_i32 = arith.constant 0 : i32
    %c0_i32_0 = arith.constant 0 : i32
    %c0_i32_1 = arith.constant 0 : i32
    %c0_i32_2 = arith.constant 0 : i32
    return %c0_i32, %c0_i32_0, %c0_i32_1 : i32, i32, i32
  }
  func.func @transform_6(%arg0: i32) -> (i32, i32) {
    %c0_i32 = arith.constant 0 : i32
    %c0_i32_0 = arith.constant 0 : i32
    %c0_i32_1 = arith.constant 0 : i32
    return %c0_i32, %c0_i32_0 : i32, i32
  }
  func.func @transform_7(%arg0: i32) -> (i32, i32, i32) {
    %c0_i32 = arith.constant 0 : i32
    %c0_i32_0 = arith.constant 0 : i32
    %c0_i32_1 = arith.constant 0 : i32
    %c0_i32_2 = arith.constant 0 : i32
    return %c0_i32, %c0_i32_0, %c0_i32_1 : i32, i32, i32
  }
  func.func @transform_8(%arg0: i32) -> (i32, i32) {
    %c0_i32 = arith.constant 0 : i32
    %c0_i32_0 = arith.constant 0 : i32
    %c0_i32_1 = arith.constant 0 : i32
    return %c0_i32, %c0_i32_0 : i32, i32
  }
  func.func @transform_9(%arg0: i32) -> (i32, i32) {
    %c0_i32 = arith.constant 0 : i32
    %c0_i32_0 = arith.constant 0 : i32
    %c0_i32_1 = arith.constant 0 : i32
    return %c0_i32, %c0_i32_0 : i32, i32
  }
  func.func @transform_10(%arg0: i32) -> (i32, i32) {
    %c0_i32 = arith.constant 0 : i32
    %c0_i32_0 = arith.constant 0 : i32
    %c0_i32_1 = arith.constant 0 : i32
    return %c0_i32, %c0_i32_0 : i32, i32
  }
  func.func @transform_11(%arg0: i32) -> (i32, i32, i32, i32) {
    %c0_i32 = arith.constant 0 : i32
    %c0_i32_0 = arith.constant 0 : i32
    %c0_i32_1 = arith.constant 0 : i32
    %c0_i32_2 = arith.constant 0 : i32
    return %arg0, %c0_i32, %c0_i32_0, %c0_i32_1 : i32, i32, i32, i32
  }
}

</mosaic_0001>

<bundles_post_ra>
// kernel: calcium_decoder_forward.1
= control target key start
LH: loop header
LB: loop body
LE: loop exit
PB: predicated region body
PF: predicated region fallthrough
CT: control target
= control target key end

     0   :  { %s3971_s17 = smov 0   ;;  %s4583_s0 = inlined_call_operand.vmem [shape: f32[2,32,128], index: 0, kind: input, shape index: {}]   ;;  %s4584_s1 = inlined_call_operand.vmem [shape: f32[2,16,96], index: 1, kind: input, shape index: {}]   ;;  %s4585_s2 = inlined_call_operand.vmem [shape: f32[2,16,1], index: 2, kind: input, shape index: {}]   ;;  %s4586_s3 = inlined_call_operand.vmem [shape: f32[2,32,16], index: 3, kind: input, shape index: {}]   ;;  %s4587_s4 = inlined_call_operand.vmem [shape: f32[2,32,1], index: 4, kind: input, shape index: {}]   ;;  %s4588_s5 = inlined_call_operand.vmem [shape: f32[3,32,32], index: 5, kind: input, shape index: {}]   ;;  %s4589_s6 = inlined_call_operand.vmem [shape: f32[32,1], index: 6, kind: input, shape index: {}]   ;;  %s4590_s7 = inlined_call_operand.vmem [shape: f32[5,16,32], index: 7, kind: input, shape index: {}]   ;;  %s4591_s8 = inlined_call_operand.vmem [shape: f32[16,1], index: 8, kind: input, shape index: {}]   ;;  %s4592_s9 = inlined_call_operand.vmem [shape: f32[4,112], index: 9, kind: input, shape index: {}]   ;;  %s4593_s10 = inlined_call_operand.vmem [shape: f32[4,1], index: 10, kind: input, shape index: {}]   ;;  %s4594_s11 = inlined_call_operand.vmem [shape: f32[2,4,4,128], index: 11, kind: output, shape index: {}]  }
   0x1 LB: > { %s2757_s18 = sadd.s32 4294967295, %s3902_s17   ;;  %p2761_p0 = scmp.ge.s32.totalorder %s3902_s17, 1  ;;  %s3902_s17 = sphi %s3971_s17, %s21_s17  }
   0x2   : > { %p337_p1 = scmp.lt.s32.totalorder %s3902_s17, 3 }
   0x4   : > { %p338_p2 = pnand %p2761_p0, %p337_p1 }
   0x5   : > { %p377_p3 = scmp.lt.s32.totalorder (!%p338_p2), %s2757_s18, 1  ;;  %v3904_v9 = vmov (!%p338_p2), 0.0   ;;  %s3905_s23 = smov (!%p338_p2), 127   ;;  %vm423_vm0 = vcmask (!%p338_p2), 1031168   ;;  %vm476_vm1 = vcmask (!%p338_p2), 7168   ;;  %v428_v41 = vld [vmem:[%s4584_s1] sm:$0xff] (!%p338_p2) }
   0x6   : > { %341 = sbr.rel (%p338_p2) target bundleno = 2635 (0xa4b), region = 64  ;;  %s3906_s24 = smov (!%p338_p2), 126   ;;  %vm497_vm2 = vcmask (!%p338_p2), 785408   ;;  %v3908_v46 = vmov (!%p338_p2), 0   ;;  %v430_v47 = vld [vmem:[%s4585_s2] sm:$0xff] (!%p338_p2)  ;;  %v431_v48 = vld [vmem:[%s4585_s2 + $0x8] sm:$0xff] (!%p338_p2) }
   0x7   : > { %s3907_s25 = smov (!%p338_p2), 1   ;;  %3058 = vmatprep.mubr.msk.f32.mxu0 (!%p338_p2), %vm497_vm2, %v428_v41  ;;  %3720 = vset.pattern.permute.xlu1 (!%p338_p2), %v3908_v46  ;;  %v688_v49 = vld [vmem:[%s4587_s4 + $0x8] sm:$0xff] (!%p338_p2)  ;;  %v687_v50 = vld [vmem:[%s4587_s4] sm:$0xff] (!%p338_p2)  ;;  %v690_v51 = vld [vmem:[%s4587_s4 + $0x18] sm:$0xff] (!%p338_p2)  ;;  %vm585_vm3 = vcmask (!%p338_p2), 130048   ;;  %v391_v41 = vlaneseq (!%p338_p2)  ;;  %vm1066_vm5 = vcmask (!%p338_p2), 261120  }
   0x8   : > { %3719 = vset.pattern.permute.xlu0 (!%p338_p2), %v3908_v46  ;;  %v689_v52 = vld [vmem:[%s4587_s4 + $0x10] sm:$0xff] (!%p338_p2)  ;;  %vm1292_vm6 = vcmask (!%p338_p2), 1039360   ;;  %vm3910_vm7 = vmmov (!%p338_p2), 0   ;;  %vm2363_vm8 = vcmask (!%p338_p2), 916480  }
   0xd   : > { %s4596_s18 = smov (!%p377_p3, %s2757_s18), 1 }
   0xe   : > { %s2848_s19 = sshll.u32 %s4596_s18, 5  ;;  %s2849_s14 = sshll.u32 %s4596_s18, 4 }
   0xf   : > { %s381_s22 = scalar_lea.vmem %s4583_s0, %s2848_s19  ;;  %s386_s19 = scalar_lea.vmem %s4594_s11, %s2849_s14 }
  0x10   : > { %v3985_v0 = vld [vmem:[%s381_s22] sm:$0xff]  ;;  %v3987_v1 = vld [vmem:[%s381_s22 + $0x8] sm:$0xff]  ;;  %v3989_v2 = vld [vmem:[%s381_s22 + $0x10] sm:$0xff] }
  0x11   : > { %v396_v3 = vmax.f32 %v3985_v0, 0.0  ;;  %v397_v4 = vmax.f32 %v3987_v1, 0.0  ;;  %v3993_v5 = vld [vmem:[%s381_s22 + $0x18] sm:$0xff]  ;;  %v398_v6 = vmax.f32 %v3989_v2, 0.0 }
  0x12   : > { %v399_v7 = vmax.f32 %v3993_v5, 0.0 }
  0x13   : > { %v3659_v8 = vpack.i.bf16 %v397_v4, %v396_v3  ;;  %v3669_v10 = vpack.i.bf16 %v3904_v9, %v396_v3  ;;  %v3679_v12 = vpack.i.bf16 %v396_v3, %v3904_v9  ;;  %v3684_v13 = vpack.i.bf16 %v398_v6, %v397_v4 }
  0x14   : > { %v3664_v11 = vpack.i.bf16 %v399_v7, %v398_v6 }
  0x15   : > { %3660 = vrot.lane.b32.xlu0 %v3659_v8, %s3905_s23  ;;  %3670 = vrot.lane.b32.xlu1 %v3669_v10, %s3906_s24 }
  0x19   : > { %3665 = vrot.lane.b32.xlu0 %v3664_v11, %s3905_s23  ;;  %417 = vrot.lane.b32.xlu1 %v397_v4, %s3906_s24 }
  0x1d   : > { %3675 = vrot.lane.b32.xlu0 %v3664_v11, %s3906_s24  ;;  %3680 = vrot.lane.b32.xlu1 %v3679_v12, %s3907_s25 }
  0x21   : > { %3685 = vrot.lane.b32.xlu0 %v3684_v13, %s3907_s25 }
  0x87   : > { %v3661_v14 = vpop.permute.xlu0 %3660  ;;  %v3671_v15 = vpop.permute.xlu1 %3670 }
  0x88   : > { %v3662_v16 = vunpack.i.l.bf16 %v3661_v14  ;;  %v4006_v17 = vunpack.i.h.bf16 %v3671_v15  ;;  %v3672_v19 = vunpack.i.l.bf16 %v3671_v15  ;;  %v3663_v22 = vunpack.i.h.bf16 %v3661_v14 }
  0x8a   : > { %v3689_v18 = vpack.i.bf16 %v3662_v16, %v399_v7  ;;  %v424_v25 = vsel %vm423_vm0, %v3672_v19, %v4006_v17 }
  0x8b   : > { %v3666_v20 = vpop.permute.xlu0 %3665  ;;  %v418_v21 = vpop.permute.xlu1 %417 }
  0x8c   : > { %v3668_v23 = vunpack.i.h.bf16 %v3666_v20  ;;  %v3667_v24 = vunpack.i.l.bf16 %v3666_v20  ;;  %3690 = vrot.lane.b32.xlu1 %v3689_v18, %s3907_s25  ;;  %v425_v29 = vsel %vm423_vm0, %v418_v21, %v4006_v17  ;;  %v3704_v32 = vpack.i.bf16 %v418_v21, %v424_v25 }
  0x8e   : > { %v3699_v26 = vpack.i.bf16 %v3672_v19, %v3668_v23  ;;  %v3694_v27 = vpack.i.bf16 %v3667_v24, %v3663_v22 }
  0x8f   : > { %v3676_v28 = vpop.permute.xlu0 %3675  ;;  %v3681_v30 = vpop.permute.xlu1 %3680 }
  0x90   : > { %v3677_v31 = vunpack.i.l.bf16 %v3676_v28  ;;  %3695 = vrot.lane.b32.xlu0 %v3694_v27, %s3907_s25  ;;  %3700 = vrot.lane.b32.xlu1 %v3699_v26, %s3907_s25  ;;  %v3683_v33 = vunpack.i.h.bf16 %v3681_v30  ;;  %v4015_v34 = vunpack.i.l.bf16 %v3681_v30  ;;  %v3678_v35 = vunpack.i.h.bf16 %v3676_v28  ;;  %v429_v26 = vld [vmem:[%s4584_s1 + $0x8] sm:$0xff]  ;;  %v581_v27 = vld [vmem:[%s4586_s3] sm:$0xff] }
  0x91   : > { %3065 = vmatprep.mubr.msk.f32.mxu1 %vm585_vm3, %v581_v27 }
  0x92   : > { %v3709_v36 = vpack.i.bf16 %v3677_v31, %v425_v29  ;;  %v426_v37 = vsel %vm423_vm0, %v3677_v31, %v4006_v17  ;;  %v477_v40 = vsel %vm476_vm1, %v4015_v34, %v3683_v33  ;;  %v427_v44 = vsel %vm423_vm0, %v3678_v35, %v4006_v17 }
  0x93   : > { %v3686_v38 = vpop.permute.xlu0 %3685  ;;  %v3714_v42 = vpack.i.bf16 %v3678_v35, %v426_v37 }
  0x94   : > { %3705 = vrot.lane.b32.xlu0 %v3704_v32, %s3907_s25  ;;  %3710 = vrot.lane.b32.xlu1 %v3709_v36, %s3907_s25  ;;  %v3687_v39 = vunpack.i.l.bf16 %v3686_v38  ;;  %v3688_v53 = vunpack.i.h.bf16 %v3686_v38  ;;  %v582_v38 = vld [vmem:[%s4586_s3 + $0x8] sm:$0xff] }
  0x96   : > { %v478_v43 = vsel %vm476_vm1, %v4015_v34, %v3687_v39  ;;  %v479_v56 = vsel %vm476_vm1, %v4015_v34, %v3688_v53  ;;  %v583_v39 = vld [vmem:[%s4586_s3 + $0x10] sm:$0xff] }
  0x97   : > { %v3384_v45 = vpack.c.bf16 %v478_v43, %v477_v40  ;;  %v584_v40 = vld [vmem:[%s4586_s3 + $0x18] sm:$0xff] }
  0x98   : > { %3715 = vrot.lane.b32.xlu0 %v3714_v42, %s3907_s25  ;;  %474 = vrot.lane.b32.xlu1 %v427_v44, %s3907_s25  ;;  %v392_v42 = vand.u32 127, %v391_v41  ;;  %v2788_v41 = vld [vmem:[%s4587_s4 + $0x28] sm:$0xff] }
  0x99   : > { %3385 = vmatprep.subr.bf16.mxu0 %v3384_v45 }
  0x9a   : > { %3387 = vmatpush3.bf16.msra.mxu0 %v3384_v45  ;;  %vm393_vm4 = vcmp.lt.s32.totalorder %v392_v42, 8  ;;  %v2789_v42 = vld [vmem:[%s4587_s4 + $0x30] sm:$0xff] }
  0x9c   : > { %434 = vperm.xlu0 %3719, %v430_v47   ;;  %439 = vperm.xlu1 %3720, %v431_v48   ;;  %v4081_v48 = vsel %vm393_vm4, 1.0, %v3904_v9 }
  0xa0   : > { %698 = vperm.xlu0 %3719, %v688_v49   ;;  %693 = vperm.xlu1 %3720, %v687_v50  }
  0xa4   : > { %708 = vperm.xlu0 %3719, %v690_v51   ;;  %703 = vperm.xlu1 %3720, %v689_v52  }
  0xfe   : > { %v3691_v54 = vpop.permute.xlu1 %3690 }
  0xff   : > { %v3692_v55 = vunpack.i.l.bf16 %v3691_v54  ;;  %v3693_v61 = vunpack.i.h.bf16 %v3691_v54 }
 0x101   : > { %v480_v57 = vsel %vm476_vm1, %v4015_v34, %v3692_v55 }
 0x102   : > { %v3696_v58 = vpop.permute.xlu0 %3695  ;;  %v3701_v59 = vpop.permute.xlu1 %3700  ;;  %v3388_v60 = vpack.c.bf16 %v480_v57, %v479_v56 }
 0x103   : > { %v3697_v62 = vunpack.i.l.bf16 %v3696_v58  ;;  %v3698_v63 = vunpack.i.h.bf16 %v3696_v58  ;;  %v3702_v3 = vunpack.i.l.bf16 %v3701_v59  ;;  %v3703_v8 = vunpack.i.h.bf16 %v3701_v59 }
 0x104   : > { %3389 = vmatprep.subr.bf16.mxu0 %v3388_v60 }
 0x105   : > { %v3392_v4 = vpack.c.bf16 %v3697_v62, %v3693_v61  ;;  %3391 = vmatpush3.bf16.msra.mxu0 %v3388_v60  ;;  %v3396_v13 = vpack.c.bf16 %v3702_v3, %v3698_v63 }
 0x106   : > { %v3706_v6 = vpop.permute.xlu0 %3705  ;;  %v3711_v7 = vpop.permute.xlu1 %3710 }
 0x107   : > { %v3708_v10 = vunpack.i.h.bf16 %v3706_v6  ;;  %v3707_v11 = vunpack.i.l.bf16 %v3706_v6  ;;  %v3712_v12 = vunpack.i.l.bf16 %v3711_v7  ;;  %3393 = vmatprep.subr.bf16.mxu0 %v3392_v4  ;;  %v3713_v18 = vunpack.i.h.bf16 %v3711_v7 }
 0x109   : > { %3395 = vmatpush3.bf16.msra.mxu0 %v3392_v4  ;;  %v481_v14 = vsel %vm476_vm1, %v3703_v8, %v3707_v11  ;;  %v482_v15 = vsel %vm476_vm1, %v3708_v10, %v3712_v12 }
 0x10a   : > { %v3716_v16 = vpop.permute.xlu0 %3715  ;;  %3397 = vmatprep.subr.bf16.mxu0 %v3396_v13  ;;  %v475_v21 = vpop.permute.xlu1 %474  ;;  %v3400_v22 = vpack.c.bf16 %v482_v15, %v481_v14 }
 0x10b   : > { %v3718_v19 = vunpack.i.h.bf16 %v3716_v16  ;;  %v3717_v20 = vunpack.i.l.bf16 %v3716_v16 }
 0x10d   : > { %v483_v23 = vsel %vm476_vm1, %v3713_v18, %v3717_v20  ;;  %v484_v24 = vsel %vm476_vm1, %v3718_v19, %v475_v21  ;;  %3399 = vmatpush3.bf16.msra.mxu0 %v3396_v13 }
 0x10e   : > { %3401 = vmatprep.subr.bf16.mxu0 %v3400_v22  ;;  %v3404_v25 = vpack.c.bf16 %v484_v24, %v483_v23 }
 0x111   : > { %3403 = vmatpush3.bf16.msra.mxu0 %v3400_v22  ;;  %v2773_v22 = vld [vmem:[%s4584_s1 + $0x10] sm:$0xff] }
 0x112   : > { %3405 = vmatprep.subr.bf16.mxu0 %v3404_v25 }
 0x115   : > { %3407 = vmatpush3.bf16.msra.mxu0 %v3404_v25 }
 0x118   : > { %3059 = vmatmul.mubr.msk.f32.vlgmr.msra.gmra.mrb[0].mxu0 %vm497_vm2, %v429_v26 }
 0x11b   : > { %v440_v28 = vpop.permute.xlu1 %439  ;;  %v435_v30 = vpop.permute.xlu0 %434 }
 0x11f   : > { %v699_v43 = vpop.permute.xlu0 %698  ;;  %v694_v45 = vpop.permute.xlu1 %693 }
 0x123   : > { %v709_v56 = vpop.permute.xlu0 %708  ;;  %v704_v58 = vpop.permute.xlu1 %703 }
 0x1eb   : > { %v3060_v29 = vpop.f32.mrb[0].mxu0 }
 0x1ec   : > { %v576_v31 = vadd.f32 %v3060_v29, %v440_v28  ;;  %v570_v32 = vpop.f32.mrb[1].mxu0 }
 0x1ed   : > { %v571_v33 = vadd.f32 %v570_v32, %v435_v30 }
 0x1ee   : > { %v580_v35 = vmax.f32 %v576_v31, 0.0 }
 0x1ef   : > { %v579_v36 = vmax.f32 %v571_v33, 0.0 }
 0x1f1   : > { %v3408_v37 = vpack.c.bf16 %v580_v35, %v579_v36 }
 0x1f3   : > { %3409 = vmatprep.subr.bf16.mxu1 %v3408_v37 }
 0x1f4   : > { %3411 = vmatpush3.bf16.msra.mxu1 %v3408_v37  ;;  %v2775_v37 = vld [vmem:[%s4585_s2 + $0x10] sm:$0xff] }
 0x1f7   : > { %3066 = vmatmul.mubr.msk.f32.vlgmr.msra.gmra.mrb[0].mxu1 %vm585_vm3, %v582_v38 }
 0x1f8   : > { %3068 = vmatprep.mubr.msk.f32.mxu1 %vm585_vm3, %v583_v39  ;;  %v2776_v39 = vld [vmem:[%s4585_s2 + $0x18] sm:$0xff] }
 0x1fb   : > { %3069 = vmatmul.mubr.msk.f32.gmra.mrb[2].mxu1 %vm585_vm3, %v584_v40  ;;  %v2787_v40 = vld [vmem:[%s4587_s4 + $0x20] sm:$0xff] }
 0x1fc   : > { %3095 = vmatprep.mubr.msk.f32.mxu1 %vm497_vm2, %v2773_v22 }
 0x2ca   : > { %v3067_v44 = vpop.f32.mrb[0].mxu1 }
 0x2cb   : > { %v684_v46 = vadd.f32 %v3067_v44, %v3987_v1  ;;  %v664_v47 = vpop.f32.mrb[1].mxu1 }
 0x2cc   : > { %v683_v49 = vadd.f32 %v664_v47, %v3985_v0 }
 0x2cd   : > { %v712_v50 = vadd.f32 %v699_v43, %v684_v46  ;;  %v2790_v43 = vld [vmem:[%s4587_s4 + $0x38] sm:$0xff] }
 0x2ce   : > { %v711_v51 = vadd.f32 %v694_v45, %v683_v49  ;;  %v3070_v52 = vpop.f32.mrb[2].mxu1 }
 0x2cf   : > { %v4085_v53 = vmul.f32 %v4081_v48, %v712_v50  ;;  %v686_v54 = vadd.f32 %v3070_v52, %v3993_v5  ;;  %v674_v55 = vpop.f32.mrb[3].mxu1 }
 0x2d0   : > { %v4089_v57 = vmul.f32 %v4081_v48, %v711_v51  ;;  %v685_v1 = vadd.f32 %v674_v55, %v3989_v2 }
 0x2d1   : > { %v720_v59 = vmax.f32 %v4085_v53, 0.0  ;;  %v714_v60 = vadd.f32 %v709_v56, %v686_v54 }
 0x2d2   : > { %v719_v0 = vmax.f32 %v4089_v57, 0.0  ;;  %v713_v61 = vadd.f32 %v704_v58, %v685_v1 }
 0x2d3   : > { %v4095_v62 = vmul.f32 %v4081_v48, %v714_v60 }
 0x2d4   : > { %v4098_v63 = vmul.f32 %v4081_v48, %v713_v61  ;;  %v3721_v5 = vpack.i.bf16 %v720_v59, %v719_v0 }
 0x2d5   : > { %v722_v3 = vmax.f32 %v4095_v62, 0.0 }
 0x2d6   : > { %v721_v4 = vmax.f32 %v4098_v63, 0.0  ;;  %3722 = vrot.lane.b32.xlu1 %v3721_v5, %s3905_s23 }
 0x2d8   : > { %v3726_v2 = vpack.i.bf16 %v722_v3, %v721_v4 }
 0x2da   : > { %3732 = vrot.lane.b32.xlu1 %v3721_v5, %s3906_s24  ;;  %3727 = vrot.lane.b32.xlu0 %v3726_v2, %s3905_s23 }
 0x2de   : > { %3742 = vrot.lane.b32.xlu1 %v3721_v5, %s3907_s25  ;;  %3737 = vrot.lane.b32.xlu0 %v3726_v2, %s3906_s24 }
 0x2e2   : > { %3747 = vrot.lane.b32.xlu0 %v3726_v2, %s3907_s25 }
 0x348   : > { %v3723_v6 = vpop.permute.xlu1 %3722 }
 0x349   : > { %3752 = vrot.lane.b32.xlu1 %v3723_v6, %s3907_s25 }
 0x34c   : > { %v3733_v7 = vpop.permute.xlu1 %3732  ;;  %v3728_v8 = vpop.permute.xlu0 %3727 }
 0x34d   : > { %v3735_v10 = vunpack.i.h.bf16 %v3733_v7  ;;  %v3734_v11 = vunpack.i.l.bf16 %v3733_v7  ;;  %3762 = vrot.lane.b32.xlu0 %v3728_v8, %s3907_s25 }
 0x34f   : > { %v743_v12 = vsel %vm423_vm0, %v3734_v11, %v4006_v17  ;;  %v744_v13 = vsel %vm423_vm0, %v3735_v10, %v4006_v17 }
 0x350   : > { %v3756_v14 = vpack.i.bf16 %v743_v12, %v3734_v11  ;;  %v3743_v15 = vpop.permute.xlu1 %3742  ;;  %v3738_v16 = vpop.permute.xlu0 %3737  ;;  %v3766_v23 = vpack.i.bf16 %v744_v13, %v3735_v10  ;;  %v2774_v12 = vld [vmem:[%s4584_s1 + $0x18] sm:$0xff]  ;;  %v2779_v13 = vld [vmem:[%s4586_s3 + $0x20] sm:$0xff] }
 0x351   : > { %v3745_v18 = vunpack.i.h.bf16 %v3743_v15  ;;  %v3744_v19 = vunpack.i.l.bf16 %v3743_v15  ;;  %v3740_v20 = vunpack.i.h.bf16 %v3738_v16  ;;  %v3739_v21 = vunpack.i.l.bf16 %v3738_v16 }
 0x352   : > { %3757 = vrot.lane.b32.xlu1 %v3756_v14, %s3907_s25  ;;  %3767 = vrot.lane.b32.xlu0 %v3766_v23, %s3907_s25 }
 0x353   : > { %v745_v24 = vsel %vm423_vm0, %v3739_v21, %v4006_v17  ;;  %v795_v25 = vsel %vm476_vm1, %v4015_v34, %v3744_v19  ;;  %v796_v26 = vsel %vm476_vm1, %v4015_v34, %v3745_v18  ;;  %v746_v27 = vsel %vm423_vm0, %v3740_v20, %v4006_v17 }
 0x354   : > { %v3771_v28 = vpack.i.bf16 %v745_v24, %v3739_v21  ;;  %v3748_v29 = vpop.permute.xlu0 %3747  ;;  %v3412_v30 = vpack.c.bf16 %v796_v26, %v795_v25  ;;  %v3776_v33 = vpack.i.bf16 %v746_v27, %v3740_v20  ;;  %v2780_v24 = vld [vmem:[%s4586_s3 + $0x28] sm:$0xff]  ;;  %v2781_v25 = vld [vmem:[%s4586_s3 + $0x30] sm:$0xff]  ;;  %v2782_v26 = vld [vmem:[%s4586_s3 + $0x38] sm:$0xff] }
 0x355   : > { %v3750_v31 = vunpack.i.h.bf16 %v3748_v29  ;;  %v3749_v32 = vunpack.i.l.bf16 %v3748_v29  ;;  %v2791_v27 = vld [vmem:[%s4588_s5 + $0x20] sm:$0xff] }
 0x356   : > { %3413 = vmatprep.subr.bf16.mxu1 %v3412_v30  ;;  %3772 = vrot.lane.b32.xlu1 %v3771_v28, %s3907_s25 }
 0x357   : > { %3415 = vmatpush3.bf16.msra.mxu1 %v3412_v30  ;;  %v797_v35 = vsel %vm476_vm1, %v4015_v34, %v3749_v32  ;;  %v798_v36 = vsel %vm476_vm1, %v4015_v34, %v3750_v31  ;;  %3777 = vrot.lane.b32.xlu0 %v3776_v33, %s3907_s25  ;;  %v2799_v33 = vld [vmem:[%s4588_s5 + $0x40] sm:$0xff] }
 0x358   : > { %v3416_v38 = vpack.c.bf16 %v798_v36, %v797_v35  ;;  %3116 = vmatprep.mubr.msk.f32.mxu0 %vm1066_vm5, %v2791_v27 }
 0x35a   : > { %3417 = vmatprep.subr.bf16.mxu1 %v3416_v38  ;;  %755 = vperm.xlu1 %3720, %v2775_v37  }
 0x35b   : > { %3419 = vmatpush3.bf16.msra.mxu1 %v3416_v38  ;;  %760 = vperm.xlu0 %3719, %v2776_v39  }
 0x35e   : > { %1011 = vperm.xlu1 %3720, %v2787_v40  }
 0x35f   : > { %1016 = vperm.xlu0 %3719, %v2788_v41  }
 0x362   : > { %1021 = vperm.xlu1 %3720, %v2789_v42  }
 0x363   : > { %1026 = vperm.xlu0 %3719, %v2790_v43  }
 0x3bb   : > { %v3753_v44 = vpop.permute.xlu1 %3752 }
 0x3bc   : > { %v3755_v45 = vunpack.i.h.bf16 %v3753_v44  ;;  %v3754_v46 = vunpack.i.l.bf16 %v3753_v44 }
 0x3be   : > { %v3420_v47 = vpack.c.bf16 %v3755_v45, %v3754_v46 }
 0x3bf   : > { %v3763_v49 = vpop.permute.xlu0 %3762 }
 0x3c0   : > { %v3765_v50 = vunpack.i.h.bf16 %v3763_v49  ;;  %v3764_v51 = vunpack.i.l.bf16 %v3763_v49  ;;  %3421 = vmatprep.subr.bf16.mxu1 %v3420_v47 }
 0x3c1   : > { %3423 = vmatpush3.bf16.msra.mxu1 %v3420_v47 }
 0x3c2   : > { %v3424_v54 = vpack.c.bf16 %v3765_v50, %v3764_v51 }
 0x3c4   : > { %v3758_v52 = vpop.permute.xlu1 %3757  ;;  %v3768_v1 = vpop.permute.xlu0 %3767  ;;  %3425 = vmatprep.subr.bf16.mxu1 %v3424_v54 }
 0x3c5   : > { %v3760_v55 = vunpack.i.h.bf16 %v3758_v52  ;;  %v3759_v56 = vunpack.i.l.bf16 %v3758_v52  ;;  %v3770_v58 = vunpack.i.h.bf16 %v3768_v1  ;;  %v3769_v59 = vunpack.i.l.bf16 %v3768_v1  ;;  %3427 = vmatpush3.bf16.msra.mxu1 %v3424_v54  ;;  %v1039_v52 = vld [vmem:[%s4589_s6 + $0x10] sm:$0xff]  ;;  %v1038_v54 = vld [vmem:[%s4589_s6 + $0x8] sm:$0xff] }
 0x3c6   : > { %v2793_v1 = vld [vmem:[%s4588_s5 + $0x30] sm:$0xff] }
 0x3c7   : > { %v799_v5 = vsel %vm476_vm1, %v3759_v56, %v3760_v55  ;;  %v800_v3 = vsel %vm476_vm1, %v3769_v59, %v3770_v58  ;;  %v2792_v55 = vld [vmem:[%s4588_s5 + $0x28] sm:$0xff]  ;;  %v2801_v58 = vld [vmem:[%s4588_s5 + $0x50] sm:$0xff]  ;;  %v1040_v59 = vld [vmem:[%s4589_s6 + $0x18] sm:$0xff] }
 0x3c8   : > { %v3773_v60 = vpop.permute.xlu1 %3772  ;;  %v3428_v2 = vpack.c.bf16 %v800_v3, %v799_v5  ;;  %v2800_v56 = vld [vmem:[%s4588_s5 + $0x48] sm:$0xff] }
 0x3c9   : > { %v3775_v0 = vunpack.i.h.bf16 %v3773_v60  ;;  %v3774_v61 = vunpack.i.l.bf16 %v3773_v60  ;;  %v3778_v4 = vpop.permute.xlu0 %3777  ;;  %v2794_v60 = vld [vmem:[%s4588_s5 + $0x38] sm:$0xff] }
 0x3ca   : > { %v3780_v6 = vunpack.i.h.bf16 %v3778_v4  ;;  %v3779_v7 = vunpack.i.l.bf16 %v3778_v4  ;;  %3429 = vmatprep.subr.bf16.mxu1 %v3428_v2 }
 0x3cb   : > { %3431 = vmatpush3.bf16.msra.mxu1 %v3428_v2  ;;  %v801_v8 = vsel %vm476_vm1, %v3774_v61, %v3775_v0  ;;  %v2802_v0 = vld [vmem:[%s4588_s5 + $0x58] sm:$0xff]  ;;  %v1172_v61 = vld [vmem:[%s4588_s5] sm:$0xff] }
 0x3cc   : > { %v802_v10 = vsel %vm476_vm1, %v3779_v7, %v3780_v6 }
 0x3cd   : > { %v3432_v11 = vpack.c.bf16 %v802_v10, %v801_v8 }
 0x3cf   : > { %3433 = vmatprep.subr.bf16.mxu1 %v3432_v11 }
 0x3d0   : > { %3435 = vmatpush3.bf16.msra.mxu1 %v3432_v11 }
 0x3d3   : > { %3096 = vmatmul.mubr.msk.f32.vlgmr.msra.gmra.mrb[4].mxu1 %vm497_vm2, %v2774_v12 }
 0x3d4   : > { %3102 = vmatprep.mubr.msk.f32.mxu1 %vm585_vm3, %v2779_v13 }
 0x3d9   : > { %v756_v16 = vpop.permute.xlu1 %755 }
 0x3da   : > { %v761_v14 = vpop.permute.xlu0 %760 }
 0x3dd   : > { %v1012_v30 = vpop.permute.xlu1 %1011 }
 0x3de   : > { %v1017_v28 = vpop.permute.xlu0 %1016 }
 0x3e1   : > { %v1022_v44 = vpop.permute.xlu1 %1021 }
 0x3e2   : > { %v1027_v42 = vpop.permute.xlu0 %1026 }
 0x4a6   : > { %v3097_v15 = vpop.f32.mrb[4].mxu1 }
 0x4a7   : > { %v893_v18 = vadd.f32 %v3097_v15, %v761_v14  ;;  %v887_v19 = vpop.f32.mrb[5].mxu1 }
 0x4a8   : > { %v888_v20 = vadd.f32 %v887_v19, %v756_v16  ;;  %v1173_v16 = vld [vmem:[%s4588_s5 + $0x8] sm:$0xff]  ;;  %v1175_v19 = vld [vmem:[%s4588_s5 + $0x18] sm:$0xff] }
 0x4a9   : > { %v897_v21 = vmax.f32 %v893_v18, 0.0  ;;  %v1174_v18 = vld [vmem:[%s4588_s5 + $0x10] sm:$0xff] }
 0x4aa   : > { %v896_v22 = vmax.f32 %v888_v20, 0.0 }
 0x4ac   : > { %v3436_v23 = vpack.c.bf16 %v897_v21, %v896_v22 }
 0x4ae   : > { %3437 = vmatprep.subr.bf16.mxu1 %v3436_v23 }
 0x4af   : > { %3439 = vmatpush3.bf16.msra.mxu1 %v3436_v23  ;;  %v4261_v23 = vld [vmem:[%s4590_s7 + $0x30] sm:$0xff] }
 0x4b2   : > { %3103 = vmatmul.mubr.msk.f32.vlgmr.msra.gmra.mrb[6].mxu1 %vm585_vm3, %v2780_v24 }
 0x4b3   : > { %3105 = vmatprep.mubr.msk.f32.mxu1 %vm585_vm3, %v2781_v25 }
 0x4b6   : > { %3106 = vmatmul.mubr.msk.f32.gmra.mrb[8].mxu1 %vm585_vm3, %v2782_v26  ;;  %v4268_v26 = vld [vmem:[%s4590_s7 + $0x20] sm:$0xff] }
 0x4b7   : > { %3130 = vmatprep.mubr.msk.f32.mxu1 %vm1066_vm5, %v2799_v33 }
 0x585   : > { %v3104_v29 = vpop.f32.mrb[6].mxu1 }
 0x586   : > { %v1001_v31 = vadd.f32 %v3104_v29, %v4085_v53  ;;  %v981_v32 = vpop.f32.mrb[7].mxu1 }
 0x587   : > { %v1000_v35 = vadd.f32 %v981_v32, %v4089_v57 }
 0x588   : > { %v1030_v36 = vadd.f32 %v1017_v28, %v1001_v31 }
 0x589   : > { %v1029_v37 = vadd.f32 %v1012_v30, %v1000_v35  ;;  %v3107_v38 = vpop.f32.mrb[8].mxu1 }
 0x58a   : > { %v1003_v39 = vadd.f32 %v3107_v38, %v4095_v62  ;;  %v991_v40 = vpop.f32.mrb[9].mxu1  ;;  %v1034_v41 = vmul.f32 %v4081_v48, %v1030_v36  ;;  %v1037_v62 = vld [vmem:[%s4589_s6] sm:$0xff] }
 0x58b   : > { %v1033_v53 = vmul.f32 %v4081_v48, %v1029_v37  ;;  %v1002_v43 = vadd.f32 %v991_v40, %v4098_v63 }
 0x58c   : > { %v1032_v45 = vadd.f32 %v1027_v42, %v1003_v39  ;;  %1286 = vrot.lane.b32.xlu0 %v1034_v41, %s3905_s23 }
 0x58d   : > { %v1031_v57 = vadd.f32 %v1022_v44, %v1002_v43  ;;  %v3440_v46 = vpack.c.bf16 %v1034_v41, %v1033_v53  ;;  %v3781_v47 = vpack.i.bf16 %v3904_v9, %v1033_v53 }
 0x58e   : > { %v1036_v49 = vmul.f32 %v4081_v48, %v1032_v45 }
 0x58f   : > { %v1035_v50 = vmul.f32 %v4081_v48, %v1031_v57  ;;  %3782 = vrot.lane.b32.xlu1 %v3781_v47, %s3905_s23  ;;  %3441 = vmatprep.subr.bf16.mxu0 %v3440_v46  ;;  %v2824_v57 = vld [vmem:[%s4590_s7 + $0x38] sm:$0xff]  ;;  %v2821_v47 = vld [vmem:[%s4590_s7 + $0x10] sm:$0xff] }
 0x590   : > { %3449 = vmatprep.subr.bf16.mxu1 %v3440_v46  ;;  %1048 = vperm.xlu0 %3719, %v1037_v62  }
 0x591   : > { %v3444_v63 = vpack.c.bf16 %v1036_v49, %v1035_v50  ;;  %3443 = vmatpush3.bf16.msra.mxu0 %v3440_v46  ;;  %3451 = vmatpush3.bf16.msra.mxu1 %v3440_v46  ;;  %v3786_v51 = vpack.i.bf16 %v1036_v49, %v1035_v50  ;;  %v4294_v46 = vld [vmem:[%s4590_s7 + $0x28] sm:$0xff] }
 0x593   : > { %3787 = vrot.lane.b32.xlu1 %v3786_v51, %s3905_s23  ;;  %3445 = vmatprep.subr.bf16.mxu0 %v3444_v63 }
 0x594   : > { %3453 = vmatprep.subr.bf16.mxu1 %v3444_v63  ;;  %1058 = vperm.xlu0 %3719, %v1039_v52  }
 0x595   : > { %3447 = vmatpush3.bf16.msra.mxu0 %v3444_v63  ;;  %3455 = vmatpush3.bf16.msra.mxu1 %v3444_v63  ;;  %v4306_v63 = vld [vmem:[%s4590_s7] sm:$0xff] }
 0x597   : > { %1053 = vperm.xlu1 %3720, %v1038_v54  }
 0x598   : > { %3117 = vmatmul.mubr.msk.f32.vlgmr.msra.gmra.mrb[2].mxu0 %vm1066_vm5, %v2792_v55  ;;  %3131 = vmatmul.mubr.msk.f32.vlgmr.msra.gmra.mrb[10].mxu1 %vm1066_vm5, %v2800_v56 }
 0x599   : > { %3119 = vmatprep.mubr.msk.f32.mxu0 %vm1066_vm5, %v2793_v1  ;;  %3133 = vmatprep.mubr.msk.f32.mxu1 %vm1066_vm5, %v2801_v58 }
 0x59b   : > { %1063 = vperm.xlu1 %3720, %v1040_v59  }
 0x59c   : > { %3120 = vmatmul.mubr.msk.f32.gmra.mrb[4].mxu0 %vm1066_vm5, %v2794_v60  ;;  %3134 = vmatmul.mubr.msk.f32.gmra.mrb[12].mxu1 %vm1066_vm5, %v2802_v0 }
 0x59d   : > { %3144 = vmatprep.mubr.msk.f32.mxu1 %vm1066_vm5, %v1172_v61  ;;  %3158 = vmatprep.mubr.msk.f32.mxu0 %vm1066_vm5, %v4268_v26 }
 0x5fe   : > { %v1287_v2 = vpop.permute.xlu0 %1286 }
 0x601   : > { %v3783_v5 = vpop.permute.xlu1 %3782 }
 0x602   : > { %v4236_v3 = vunpack.i.h.bf16 %v3783_v5  ;;  %v3784_v4 = vunpack.i.l.bf16 %v3783_v5 }
 0x604   : > { %v1293_v6 = vsel %vm1292_vm6, %v3784_v4, %v4236_v3  ;;  %v1294_v7 = vsel %vm1292_vm6, %v1287_v2, %v4236_v3 }
 0x605   : > { %v3788_v8 = vpop.permute.xlu1 %3787  ;;  %v3456_v10 = vpack.c.bf16 %v1294_v7, %v1293_v6 }
 0x606   : > { %v3790_v11 = vunpack.i.h.bf16 %v3788_v8  ;;  %v3789_v12 = vunpack.i.l.bf16 %v3788_v8 }
 0x607   : > { %3457 = vmatprep.subr.bf16.mxu1 %v3456_v10 }
 0x608   : > { %3459 = vmatpush3.bf16.msra.mxu1 %v3456_v10  ;;  %v1295_v13 = vsel %vm1292_vm6, %v3789_v12, %v4236_v3  ;;  %v1296_v14 = vsel %vm1292_vm6, %v3790_v11, %v4236_v3  ;;  %v1410_v10 = vld [vmem:[%s4591_s8] sm:$0xff]  ;;  %v2822_v11 = vld [vmem:[%s4590_s7 + $0x18] sm:$0xff]  ;;  %v4338_v12 = vld [vmem:[%s4590_s7 + $0x8] sm:$0xff] }
 0x609   : > { %v3460_v15 = vpack.c.bf16 %v1296_v14, %v1295_v13  ;;  %v2817_v13 = vld [vmem:[%s4590_s7 + $0x40] sm:$0xff]  ;;  %v1411_v14 = vld [vmem:[%s4591_s8 + $0x8] sm:$0xff] }
 0x60b   : > { %3461 = vmatprep.subr.bf16.mxu1 %v3460_v15 }
 0x60c   : > { %3463 = vmatpush3.bf16.msra.mxu1 %v3460_v15 }
 0x60f   : > { %3145 = vmatmul.mubr.msk.f32.vlgmr.msra.gmra.mrb[10].mxu1 %vm1066_vm5, %v1173_v16  ;;  %v1049_v21 = vpop.permute.xlu0 %1048 }
 0x610   : > { %3147 = vmatprep.mubr.msk.f32.mxu1 %vm1066_vm5, %v1174_v18 }
 0x613   : > { %3148 = vmatmul.mubr.msk.f32.gmra.mrb[12].mxu1 %vm1066_vm5, %v1175_v19  ;;  %v1059_v32 = vpop.permute.xlu0 %1058 }
 0x614   : > { %3191 = vmatprep.mubr.msk.f32.mxu1 %vm1066_vm5, %v4261_v23 }
 0x616   : > { %v1054_v20 = vpop.permute.xlu1 %1053 }
 0x61a   : > { %v1064_v29 = vpop.permute.xlu1 %1063 }
 0x66b   : > { %v3118_v22 = vpop.f32.mrb[2].mxu0 }
 0x66c   : > { %v1151_v24 = vadd.f32 %v3118_v22, %v1054_v20  ;;  %v1145_v25 = vpop.f32.mrb[3].mxu0 }
 0x66d   : > { %v1146_v27 = vadd.f32 %v1145_v25, %v1049_v21 }
 0x66e   : > { %v1165_v28 = vmax.f32 %v1151_v24, 0.0 }
 0x66f   : > { %v1164_v30 = vmax.f32 %v1146_v27, 0.0  ;;  %v3121_v31 = vpop.f32.mrb[4].mxu0 }
 0x670   : > { %v1169_v33 = vmul.f32 %v4081_v48, %v1165_v28  ;;  %v1161_v35 = vadd.f32 %v3121_v31, %v1064_v29  ;;  %v1155_v36 = vpop.f32.mrb[5].mxu0 }
 0x671   : > { %v1168_v37 = vmul.f32 %v4081_v48, %v1164_v30  ;;  %v1156_v38 = vadd.f32 %v1155_v36, %v1059_v32 }
 0x672   : > { %v1167_v39 = vmax.f32 %v1161_v35, 0.0 }
 0x673   : > { %v4274_v40 = vpack.c.bf16 %v1169_v33, %v1168_v37  ;;  %v1166_v41 = vmax.f32 %v1156_v38, 0.0  ;;  %v3801_v42 = vpack.i.bf16 %v1169_v33, %v1168_v37 }
 0x674   : > { %v1171_v53 = vmul.f32 %v4081_v48, %v1167_v39 }
 0x675   : > { %v1170_v43 = vmul.f32 %v4081_v48, %v1166_v41  ;;  %3465 = vmatprep.subr.bf16.mxu0 %v4274_v40  ;;  %3489 = vmatprep.subr.bf16.mxu1 %v4274_v40 }
 0x676   : > { %3467 = vmatpush3.bf16.msra.mxu0 %v4274_v40  ;;  %3491 = vmatpush3.bf16.msra.mxu1 %v4274_v40 }
 0x677   : > { %v4282_v44 = vpack.c.bf16 %v1171_v53, %v1170_v43  ;;  %v3806_v45 = vpack.i.bf16 %v1171_v53, %v1170_v43 }
 0x679   : > { %3469 = vmatprep.subr.bf16.mxu0 %v4282_v44  ;;  %3493 = vmatprep.subr.bf16.mxu1 %v4282_v44 }
 0x67a   : > { %3471 = vmatpush3.bf16.msra.mxu0 %v4282_v44  ;;  %3495 = vmatpush3.bf16.msra.mxu1 %v4282_v44 }
 0x67d   : > { %3192 = vmatmul.mubr.msk.f32.vlgmr.msra.gmra.mrb[14].mxu1 %vm1066_vm5, %v2824_v57  ;;  %3159 = vmatmul.mubr.msk.f32.vlgmr.msra.gmra.mrb[6].mxu0 %vm1066_vm5, %v4294_v46 }
 0x67e   : > { %3202 = vmatprep.mubr.msk.f32.mxu1 %vm1066_vm5, %v2821_v47  ;;  %3169 = vmatprep.mubr.msk.f32.mxu0 %vm1066_vm5, %v4306_v63 }
 0x6e2   : > { %v3146_v62 = vpop.f32.mrb[10].mxu1 }
 0x6e3   : > { %v1399_v49 = vadd.f32 %v3146_v62, %v1054_v20  ;;  %v1379_v50 = vpop.f32.mrb[11].mxu1 }
 0x6e4   : > { %v1398_v51 = vadd.f32 %v1379_v50, %v1049_v21 }
 0x6e5   : > { %v1403_v52 = vmax.f32 %v1399_v49, 0.0 }
 0x6e6   : > { %v1402_v54 = vmax.f32 %v1398_v51, 0.0  ;;  %v3149_v55 = vpop.f32.mrb[12].mxu1 }
 0x6e7   : > { %v1407_v56 = vmul.f32 %v4081_v48, %v1403_v52  ;;  %v1401_v1 = vadd.f32 %v3149_v55, %v1064_v29  ;;  %v1389_v58 = vpop.f32.mrb[13].mxu1 }
 0x6e8   : > { %v1406_v59 = vmul.f32 %v4081_v48, %v1402_v54  ;;  %v1400_v60 = vadd.f32 %v1389_v58, %v1059_v32 }
 0x6e9   : > { %v1405_v0 = vmax.f32 %v1401_v1, 0.0 }
 0x6ea   : > { %v4312_v61 = vpack.c.bf16 %v1407_v56, %v1406_v59  ;;  %v1404_v5 = vmax.f32 %v1400_v60, 0.0  ;;  %v3791_v4 = vpack.i.bf16 %v1407_v56, %v1406_v59 }
 0x6eb   : > { %v1409_v2 = vmul.f32 %v4081_v48, %v1405_v0 }
 0x6ec   : > { %v1408_v6 = vmul.f32 %v4081_v48, %v1404_v5  ;;  %3792 = vrot.lane.b32.xlu0 %v3791_v4, %s3907_s25  ;;  %3473 = vmatprep.subr.bf16.mxu0 %v4312_v61 }
 0x6ed   : > { %3497 = vmatprep.subr.bf16.mxu1 %v4312_v61  ;;  %3475 = vmatpush3.bf16.msra.mxu0 %v4312_v61 }
 0x6ee   : > { %v4320_v7 = vpack.c.bf16 %v1409_v2, %v1408_v6  ;;  %3499 = vmatpush3.bf16.msra.mxu1 %v4312_v61  ;;  %v3796_v8 = vpack.i.bf16 %v1409_v2, %v1408_v6 }
 0x6f0   : > { %3797 = vrot.lane.b32.xlu1 %v3796_v8, %s3907_s25  ;;  %3802 = vrot.lane.b32.xlu0 %v3801_v42, %s3905_s23  ;;  %v2818_v42 = vld [vmem:[%s4590_s7 + $0x48] sm:$0xff] }
 0x6f1   : > { %3477 = vmatprep.subr.bf16.mxu0 %v4320_v7  ;;  %3501 = vmatprep.subr.bf16.mxu1 %v4320_v7 }
 0x6f2   : > { %3479 = vmatpush3.bf16.msra.mxu0 %v4320_v7  ;;  %3503 = vmatpush3.bf16.msra.mxu1 %v4320_v7 }
 0x6f3   : > { %3529 = vmatprep.subr.bf16.mxu1 %v4312_v61 }
 0x6f4   : > { %3807 = vrot.lane.b32.xlu1 %v3806_v45, %s3905_s23  ;;  %1687 = vperm.xlu0 %3719, %v1410_v10  }
 0x6f5   : > { %3203 = vmatmul.mubr.msk.f32.vlgmr.msra.gmra.mrb[14].mxu1 %vm1066_vm5, %v2822_v11  ;;  %3170 = vmatmul.mubr.msk.f32.vlgmr.msra.gmra.mrb[6].mxu0 %vm1066_vm5, %v4338_v12 }
 0x6f6   : > { %3531 = vmatpush3.bf16.msra.mxu1 %v4312_v61  ;;  %3246 = vmatprep.mubr.msk.f32.mxu1 %vm1066_vm5, %v4261_v23 }
 0x6f7   : > { %3533 = vmatprep.subr.bf16.mxu1 %v4320_v7  ;;  %3180 = vmatprep.mubr.msk.f32.mxu0 %vm1066_vm5, %v2817_v13 }
 0x6f8   : > { %1692 = vperm.xlu1 %3720, %v1411_v14  }
 0x6fa   : > { %3535 = vmatpush3.bf16.msra.mxu1 %v4320_v7 }
 0x6fd   : > { %3247 = vmatmul.mubr.msk.f32.vlgmr.msra.gmra.mrb[16].mxu1 %vm1066_vm5, %v2824_v57 }
 0x6fe   : > { %3257 = vmatprep.mubr.msk.f32.mxu1 %vm1066_vm5, %v2821_v47 }
 0x75e   : > { %v3793_v15 = vpop.permute.xlu0 %3792 }
 0x75f   : > { %v3795_v16 = vunpack.i.h.bf16 %v3793_v15  ;;  %v3794_v18 = vunpack.i.l.bf16 %v3793_v15 }
 0x761   : > { %v1594_v19 = vsel %vm476_vm1, %v4015_v34, %v3794_v18  ;;  %v1595_v20 = vsel %vm476_vm1, %v4015_v34, %v3795_v16 }
 0x762   : > { %v3798_v21 = vpop.permute.xlu1 %3797  ;;  %v3803_v22 = vpop.permute.xlu0 %3802  ;;  %v3480_v23 = vpack.c.bf16 %v1595_v20, %v1594_v19 }
 0x763   : > { %v3800_v24 = vunpack.i.h.bf16 %v3798_v21  ;;  %v3799_v25 = vunpack.i.l.bf16 %v3798_v21  ;;  %v3805_v27 = vunpack.i.h.bf16 %v3803_v22  ;;  %v3804_v28 = vunpack.i.l.bf16 %v3803_v22 }
 0x764   : > { %3481 = vmatprep.subr.bf16.mxu0 %v3480_v23 }
 0x765   : > { %v1955_v29 = vsel %vm1292_vm6, %v3805_v27, %v4236_v3  ;;  %v1954_v30 = vsel %vm1292_vm6, %v3804_v28, %v4236_v3  ;;  %3483 = vmatpush3.bf16.msra.mxu0 %v3480_v23  ;;  %v1596_v31 = vsel %vm476_vm1, %v4015_v34, %v3799_v25  ;;  %v1597_v32 = vsel %vm476_vm1, %v4015_v34, %v3800_v24 }
 0x766   : > { %v3512_v33 = vpack.c.bf16 %v1955_v29, %v1954_v30  ;;  %v3808_v35 = vpop.permute.xlu1 %3807  ;;  %v3484_v36 = vpack.c.bf16 %v1597_v32, %v1596_v31  ;;  %v3909_v24 = vmov 0.0|0.0  }
 0x767   : > { %v3810_v37 = vunpack.i.h.bf16 %v3808_v35  ;;  %v3809_v38 = vunpack.i.l.bf16 %v3808_v35 }
 0x768   : > { %3485 = vmatprep.subr.bf16.mxu0 %v3484_v36  ;;  %3537 = vmatprep.subr.bf16.mxu1 %v3512_v33 }
 0x769   : > { %v1957_v39 = vsel %vm1292_vm6, %v3810_v37, %v4236_v3  ;;  %v1956_v41 = vsel %vm1292_vm6, %v3809_v38, %v4236_v3  ;;  %3487 = vmatpush3.bf16.msra.mxu0 %v3484_v36  ;;  %3539 = vmatpush3.bf16.msra.mxu1 %v3512_v33 }
 0x76a   : > { %v3516_v53 = vpack.c.bf16 %v1957_v39, %v1956_v41  ;;  %3505 = vmatprep.subr.bf16.mxu0 %v4312_v61 }
 0x76c   : > { %3181 = vmatmul.mubr.msk.f32.vlgmr.msra.gmra.mrb[6].mxu0 %vm1066_vm5, %v2818_v42  ;;  %3541 = vmatprep.subr.bf16.mxu1 %v3516_v53 }
 0x76d   : > { %3507 = vmatpush3.bf16.msra.mxu0 %v4312_v61  ;;  %3543 = vmatpush3.bf16.msra.mxu1 %v3516_v53 }
 0x76e   : > { %3509 = vmatprep.subr.bf16.mxu0 %v4320_v7  ;;  %3213 = vmatprep.mubr.msk.f32.mxu0 %vm1066_vm5, %v4268_v26 }
 0x76f   : > { %3544 = vmatprep.subr.bf16.mxu1 %v3909_v24 }
 0x770   : > { %3258 = vmatmul.mubr.msk.f32.vlgmr.msra.gmra.mrb[16].mxu1 %vm1066_vm5, %v2822_v11 }
 0x771   : > { %3511 = vmatpush3.bf16.msra.mxu0 %v4320_v7  ;;  %3288 = vmatprep.mubr.msk.f32.mxu1 %vm3910_vm7, %v3904_v9 }
 0x772   : > { %3513 = vmatprep.subr.bf16.mxu0 %v3512_v33 }
 0x773   : > { %v1688_v45 = vpop.permute.xlu0 %1687 }
 0x774   : > { %3214 = vmatmul.mubr.msk.f32.vlgmr.msra.gmra.mrb[8].mxu0 %vm1066_vm5, %v4294_v46 }
 0x775   : > { %3515 = vmatpush3.bf16.msra.mxu0 %v3512_v33  ;;  %3224 = vmatprep.mubr.msk.f32.mxu0 %vm1066_vm5, %v4306_v63 }
 0x776   : > { %3517 = vmatprep.subr.bf16.mxu0 %v3516_v53 }
 0x777   : > { %v1693_v26 = vpop.permute.xlu1 %1692 }
 0x779   : > { %3519 = vmatpush3.bf16.msra.mxu0 %v3516_v53 }
 0x77a   : > { %3521 = vmatprep.subr.bf16.mxu0 %v4274_v40 }
 0x77c   : > { %3225 = vmatmul.mubr.msk.f32.vlgmr.msra.gmra.mrb[8].mxu0 %vm1066_vm5, %v4338_v12 }
 0x77d   : > { %3523 = vmatpush3.bf16.msra.mxu0 %v4274_v40  ;;  %3235 = vmatprep.mubr.msk.f32.mxu0 %vm1066_vm5, %v2817_v13 }
 0x77e   : > { %3525 = vmatprep.subr.bf16.mxu0 %v4282_v44 }
 0x781   : > { %3527 = vmatpush3.bf16.msra.mxu0 %v4282_v44 }
 0x782   : > { %3565 = vmatprep.subr.bf16.mxu0 %v3909_v24 }
 0x784   : > { %3236 = vmatmul.mubr.msk.f32.vlgmr.msra.gmra.mrb[8].mxu0 %vm1066_vm5, %v2818_v42 }
 0x785   : > { %3319 = vmatprep.mubr.msk.f32.mxu0 %vm3910_vm7, %v3904_v9 }
 0x7c8   : > { %v3204_v43 = vpop.f32.mrb[14].mxu1 }
 0x7c9   : > { %v1866_v57 = vadd.f32 %v3204_v43, %v1693_v26  ;;  %v1856_v46 = vpop.f32.mrb[15].mxu1 }
 0x7ca   : > { %v1865_v47 = vadd.f32 %v1856_v46, %v1688_v45 }
 0x7cb   : > { %v2273_v62 = vmax.f32 %v1866_v57, 0.0 }
 0x7cc   : > { %v2272_v49 = vmax.f32 %v1865_v47, 0.0 }
 0x7cd   : > { %v4399_v50 = vmul.f32 %v4081_v48, %v2273_v62 }
 0x7ce   : > { %v4402_v40 = vmul.f32 %v4081_v48, %v2272_v49 }
 0x7d0   : > { %v3816_v63 = vpack.i.bf16 %v4399_v50, %v4402_v40  ;;  %v3611_v44 = vpack.c.bf16 %v4399_v50, %v4402_v40 }
 0x7d2   : > { %3817 = vrot.lane.b32.xlu1 %v3816_v63, %s3905_s23 }
 0x83f   : > { %v3182_v51 = vpop.f32.mrb[6].mxu0 }
 0x840   : > { %v1696_v52 = vadd.f32 %v3182_v51, %v1693_v26  ;;  %v1674_v54 = vpop.f32.mrb[7].mxu0 }
 0x841   : > { %v1695_v55 = vadd.f32 %v1688_v45, %v1674_v54 }
 0x842   : > { %v2269_v56 = vmax.f32 %v1696_v52, 0.0 }
 0x843   : > { %v2268_v1 = vmax.f32 %v1695_v55, 0.0  ;;  %v3259_v58 = vpop.f32.mrb[16].mxu1 }
 0x844   : > { %v4410_v59 = vmul.f32 %v4081_v48, %v2269_v56  ;;  %v2267_v60 = vadd.f32 %v3259_v58, %v1693_v26  ;;  %v3818_v0 = vpop.permute.xlu1 %3817  ;;  %v2257_v61 = vpop.f32.mrb[17].mxu1 }
 0x845   : > { %v4413_v5 = vmul.f32 %v4081_v48, %v2268_v1  ;;  %v3820_v4 = vunpack.i.h.bf16 %v3818_v0  ;;  %v3819_v2 = vunpack.i.l.bf16 %v3818_v0  ;;  %v2266_v6 = vadd.f32 %v2257_v61, %v1688_v45 }
 0x846   : > { %v2281_v7 = vmax.f32 %v2267_v60, 0.0 }
 0x847   : > { %v4417_v8 = vsel %vm1292_vm6, %v3820_v4, %v4236_v3  ;;  %v4421_v10 = vsel %vm1292_vm6, %v3819_v2, %v4236_v3  ;;  %v2280_v11 = vmax.f32 %v2266_v6, 0.0  ;;  %v3811_v14 = vpack.i.bf16 %v4410_v59, %v4413_v5 }
 0x848   : > { %v4424_v12 = vmul.f32 %v4081_v48, %v2281_v7  ;;  %v3623_v13 = vpack.c.bf16 %v4417_v8, %v4421_v10  ;;  %v3608_v16 = vpack.c.bf16 %v4410_v59, %v4413_v5 }
 0x849   : > { %v4431_v15 = vmul.f32 %v4081_v48, %v2280_v11  ;;  %3812 = vrot.lane.b32.xlu0 %v3811_v14, %s3905_s23 }
 0x84b   : > { %v3826_v18 = vpack.i.bf16 %v4424_v12, %v4431_v15  ;;  %v3617_v19 = vpack.c.bf16 %v4424_v12, %v4431_v15 }
 0x84d   : > { %3827 = vrot.lane.b32.xlu1 %v3826_v18, %s3905_s23 }
 0x851   : > { %3837 = vrot.lane.b32.xlu1 %v3816_v63, %s3906_s24 }
 0x857   : > { %v3237_v20 = vpop.f32.mrb[8].mxu0 }
 0x858   : > { %v2115_v21 = vadd.f32 %v3237_v20, %v1693_v26  ;;  %v2103_v22 = vpop.f32.mrb[9].mxu0 }
 0x859   : > { %v2114_v23 = vadd.f32 %v2103_v22, %v1688_v45 }
 0x85a   : > { %v2277_v25 = vmax.f32 %v2115_v21, 0.0 }
 0x85b   : > { %v2276_v27 = vmax.f32 %v2114_v23, 0.0 }
 0x85c   : > { %v4445_v28 = vmul.f32 %v4081_v48, %v2277_v25 }
 0x85d   : > { %v4448_v29 = vmul.f32 %v4081_v48, %v2276_v27 }
 0x85f   : > { %v3846_v30 = vpack.i.bf16 %v4445_v28, %v4448_v29  ;;  %v3614_v31 = vpack.c.bf16 %v4445_v28, %v4448_v29 }
 0x861   : > { %3847 = vrot.lane.b32.xlu1 %v3846_v30, %s3907_s25  ;;  %3822 = vrot.lane.b32.xlu0 %v3846_v30, %s3905_s23  ;;  %v2284_v30 = vld [vmem:[%s4593_s10] sm:$0xf] }
 0x865   : > { %3832 = vrot.lane.b32.xlu0 %v3811_v14, %s3906_s24 }
 0x869   : > { %3842 = vrot.lane.b32.xlu0 %v3816_v63, %s3907_s25 }
 0x86d   : > { %3852 = vrot.lane.b32.xlu0 %v3826_v18, %s3907_s25 }
 0x871   : > { %3862 = vrot.lane.b32.xlu0 %v3818_v0, %s3907_s25 }
 0x8bb   : > { %v3813_v48 = vpop.permute.xlu0 %3812 }
 0x8bc   : > { %v3815_v32 = vunpack.i.h.bf16 %v3813_v48  ;;  %v3814_v33 = vunpack.i.l.bf16 %v3813_v48  ;;  %3857 = vrot.lane.b32.xlu1 %v3813_v48, %s3907_s25 }
 0x8be   : > { %v4462_v35 = vsel %vm1292_vm6, %v3815_v32, %v4236_v3  ;;  %v4466_v36 = vsel %vm1292_vm6, %v3814_v33, %v4236_v3 }
 0x8bf   : > { %v3828_v37 = vpop.permute.xlu1 %3827  ;;  %v3620_v38 = vpack.c.bf16 %v4462_v35, %v4466_v36 }
 0x8c0   : > { %3872 = vrot.lane.b32.xlu0 %v3828_v37, %s3907_s25 }
 0x8c3   : > { %v3838_v39 = vpop.permute.xlu1 %3837 }
 0x8c4   : > { %v3840_v52 = vunpack.i.h.bf16 %v3838_v39  ;;  %v3839_v56 = vunpack.i.l.bf16 %v3838_v39 }
 0x8c6   : > { %v2533_v61 = vsel %vm423_vm0, %v3840_v52, %v4006_v17  ;;  %v2532_v6 = vsel %vm423_vm0, %v3839_v56, %v4006_v17 }
 0x8c7   : > { %v3891_v14 = vpack.i.bf16 %v2533_v61, %v3840_v52  ;;  %v3886_v21 = vpack.i.bf16 %v2532_v6, %v3839_v56 }
 0x8d3   : > { %v3848_v41 = vpop.permute.xlu1 %3847  ;;  %v3823_v42 = vpop.permute.xlu0 %3822 }
 0x8d4   : > { %v3850_v53 = vunpack.i.h.bf16 %v3848_v41  ;;  %v3849_v26 = vunpack.i.l.bf16 %v3848_v41  ;;  %v3825_v43 = vunpack.i.h.bf16 %v3823_v42  ;;  %v3824_v45 = vunpack.i.l.bf16 %v3823_v42  ;;  %3867 = vrot.lane.b32.xlu1 %v3823_v42, %s3907_s25 }
 0x8d6   : > { %v2346_v57 = vsel %vm476_vm1, %v4015_v34, %v3850_v53  ;;  %v2345_v46 = vsel %vm476_vm1, %v4015_v34, %v3849_v26  ;;  %v4478_v47 = vsel %vm1292_vm6, %v3825_v43, %v4236_v3  ;;  %v4482_v62 = vsel %vm1292_vm6, %v3824_v45, %v4236_v3 }
 0x8d7   : > { %v3548_v49 = vpack.c.bf16 %v2346_v57, %v2345_v46  ;;  %v3626_v63 = vpack.c.bf16 %v4478_v47, %v4482_v62  ;;  %v3833_v51 = vpop.permute.xlu0 %3832 }
 0x8d8   : > { %v3835_v54 = vunpack.i.h.bf16 %v3833_v51  ;;  %v3834_v55 = vunpack.i.l.bf16 %v3833_v51 }
 0x8d9   : > { %3567 = vmatpush3.bf16.msra.mxu0 %v3548_v49 }
 0x8da   : > { %v2443_v3 = vsel %vm423_vm0, %v3835_v54, %v4006_v17  ;;  %v2442_v1 = vsel %vm423_vm0, %v3834_v55, %v4006_v17  ;;  %3568 = vmatprep.subr.bf16.mxu0 %v3909_v24 }
 0x8db   : > { %v3881_v58 = vpack.i.bf16 %v2443_v3, %v3835_v54  ;;  %v3876_v60 = vpack.i.bf16 %v2442_v1, %v3834_v55  ;;  %v3843_v0 = vpop.permute.xlu0 %3842 }
 0x8dc   : > { %v3845_v4 = vunpack.i.h.bf16 %v3843_v0  ;;  %v3844_v2 = vunpack.i.l.bf16 %v3843_v0  ;;  %v2285_v0 = vld [vmem:[%s4592_s9] sm:$0xf] }
 0x8dd   : > { %3882 = vrot.lane.b32.xlu0 %v3881_v58, %s3907_s25  ;;  %3877 = vrot.lane.b32.xlu1 %v3876_v60, %s3907_s25 }
 0x8de   : > { %v2344_v7 = vsel %vm476_vm1, %v4015_v34, %v3845_v4  ;;  %v2343_v11 = vsel %vm476_vm1, %v4015_v34, %v3844_v2 }
 0x8df   : > { %v3545_v18 = vpack.c.bf16 %v2344_v7, %v2343_v11  ;;  %v3853_v20 = vpop.permute.xlu0 %3852 }
 0x8e0   : > { %v3855_v22 = vunpack.i.h.bf16 %v3853_v20  ;;  %v3854_v23 = vunpack.i.l.bf16 %v3853_v20 }
 0x8e1   : > { %3546 = vmatpush3.bf16.msra.mxu1 %v3545_v18  ;;  %3892 = vrot.lane.b32.xlu0 %v3891_v14, %s3907_s25 }
 0x8e2   : > { %v2348_v17 = vsel %vm476_vm1, %v4015_v34, %v3855_v22  ;;  %v2347_v25 = vsel %vm476_vm1, %v4015_v34, %v3854_v23  ;;  %3887 = vrot.lane.b32.xlu1 %v3886_v21, %s3907_s25  ;;  %3547 = vmatprep.subr.bf16.mxu1 %v3909_v24 }
 0x8e3   : > { %v3551_v27 = vpack.c.bf16 %v2348_v17, %v2347_v25  ;;  %v3863_v34 = vpop.permute.xlu0 %3862 }
 0x8e4   : > { %v3865_v37 = vunpack.i.h.bf16 %v3863_v34  ;;  %v3864_v39 = vunpack.i.l.bf16 %v3863_v34 }
 0x8e5   : > { %3549 = vmatpush3.bf16.msra.mxu1 %v3548_v49  ;;  %3570 = vmatpush3.bf16.msra.mxu0 %v3551_v27 }
 0x8e6   : > { %2312 = vperm.xlu1 %3720, %v2284_v30   ;;  %3550 = vmatprep.subr.bf16.mxu1 %v3909_v24  ;;  %v3557_v42 = vpack.c.bf16 %v3865_v37, %v3864_v39 }
 0x8e7   : > { %3571 = vmatprep.subr.bf16.mxu0 %v3909_v24 }
 0x8e9   : > { %3552 = vmatpush3.bf16.msra.mxu1 %v3551_v27 }
 0x8ea   : > { %3553 = vmatprep.subr.bf16.mxu1 %v3909_v24 }
 0x92e   : > { %v3858_v48 = vpop.permute.xlu1 %3857 }
 0x92f   : > { %v3860_v32 = vunpack.i.h.bf16 %v3858_v48  ;;  %v3859_v33 = vunpack.i.l.bf16 %v3858_v48 }
 0x931   : > { %v3554_v41 = vpack.c.bf16 %v3860_v32, %v3859_v33 }
 0x932   : > { %v3873_v53 = vpop.permute.xlu0 %3872 }
 0x933   : > { %3555 = vmatpush3.bf16.msra.mxu1 %v3554_v41  ;;  %3573 = vmatpush3.bf16.msra.mxu0 %v3554_v41  ;;  %v3875_v57 = vunpack.i.h.bf16 %v3873_v53  ;;  %v3874_v46 = vunpack.i.l.bf16 %v3873_v53 }
 0x934   : > { %3556 = vmatprep.subr.bf16.mxu1 %v3909_v24  ;;  %3574 = vmatprep.subr.bf16.mxu0 %v3909_v24 }
 0x935   : > { %v3563_v1 = vpack.c.bf16 %v3875_v57, %v3874_v46 }
 0x937   : > { %3558 = vmatpush3.bf16.msra.mxu1 %v3557_v42  ;;  %3576 = vmatpush3.bf16.msra.mxu0 %v3557_v42 }
 0x938   : > { %3559 = vmatprep.subr.bf16.mxu1 %v3909_v24  ;;  %3577 = vmatprep.subr.bf16.mxu0 %v3909_v24 }
 0x946   : > { %v3868_v26 = vpop.permute.xlu1 %3867 }
 0x947   : > { %v3870_v43 = vunpack.i.h.bf16 %v3868_v26  ;;  %v3869_v45 = vunpack.i.l.bf16 %v3868_v26 }
 0x949   : > { %v3560_v49 = vpack.c.bf16 %v3870_v43, %v3869_v45 }
 0x94b   : > { %3561 = vmatpush3.bf16.msra.mxu1 %v3560_v49  ;;  %3579 = vmatpush3.bf16.msra.mxu0 %v3560_v49 }
 0x94c   : > { %3562 = vmatprep.subr.bf16.mxu1 %v3909_v24  ;;  %3580 = vmatprep.subr.bf16.mxu0 %v3909_v24 }
 0x94f   : > { %v3883_v51 = vpop.permute.xlu0 %3882  ;;  %v3878_v52 = vpop.permute.xlu1 %3877  ;;  %3564 = vmatpush3.bf16.msra.mxu1 %v3563_v1  ;;  %3582 = vmatpush3.bf16.msra.mxu0 %v3563_v1 }
 0x950   : > { %v3885_v54 = vunpack.i.h.bf16 %v3883_v51  ;;  %v3884_v55 = vunpack.i.l.bf16 %v3883_v51  ;;  %v3880_v56 = vunpack.i.h.bf16 %v3878_v52  ;;  %v3879_v3 = vunpack.i.l.bf16 %v3878_v52  ;;  %3583 = vmatprep.subr.bf16.mxu0 %v3909_v24  ;;  %3586 = vmatprep.subr.bf16.mxu1 %v3909_v24 }
 0x952   : > { %v2453_v58 = vsel %vm476_vm1, %v3884_v55, %v3885_v54  ;;  %v2452_v60 = vsel %vm476_vm1, %v3879_v3, %v3880_v56  ;;  %3289 = vmatmul.mubr.msk.f32.vlgmr.msra.gmra.mrb[18].mxu1 %vm2363_vm8, %v2285_v0 }
 0x953   : > { %v3584_v61 = vpack.c.bf16 %v2453_v58, %v2452_v60  ;;  %3588 = vmatpush3.bf16.msra.mxu1 %v3551_v27  ;;  %3350 = vmatprep.mubr.msk.f32.mxu1 %vm3910_vm7, %v3904_v9  ;;  %v3893_v4 = vpop.permute.xlu0 %3892 }
 0x954   : > { %3589 = vmatprep.subr.bf16.mxu1 %v3909_v24  ;;  %v3888_v2 = vpop.permute.xlu1 %3887  ;;  %v3894_v59 = vunpack.i.l.bf16 %v3893_v4 }
 0x955   : > { %3585 = vmatpush3.bf16.msra.mxu0 %v3584_v61  ;;  %v3890_v5 = vunpack.i.h.bf16 %v3888_v2  ;;  %v3889_v50 = vunpack.i.l.bf16 %v3888_v2 }
 0x956   : > { %3607 = vmatprep.subr.bf16.mxu0 %v3909_v24 }
 0x957   : > { %3591 = vmatpush3.bf16.msra.mxu1 %v3554_v41 }
 0x958   : > { %3320 = vmatmul.mubr.msk.f32.vlgmr.msra.gmra.mrb[10].mxu0 %vm2363_vm8, %v2285_v0  ;;  %3592 = vmatprep.subr.bf16.mxu1 %v3909_v24 }
 0x959   : > { %3609 = vmatpush3.bf16.msra.mxu0 %v3608_v16  ;;  %3381 = vmatprep.mubr.msk.f32.mxu0 %vm3910_vm7, %v3904_v9  ;;  %v3895_v9 = vunpack.i.h.bf16 %v3893_v4 }
 0x95a   : > { %3610 = vmatprep.subr.bf16.mxu0 %v3909_v24 }
 0x95b   : > { %3594 = vmatpush3.bf16.msra.mxu1 %v3557_v42  ;;  %v2543_v40 = vsel %vm476_vm1, %v3894_v59, %v3895_v9 }
 0x95c   : > { %3595 = vmatprep.subr.bf16.mxu1 %v3909_v24 }
 0x95d   : > { %3612 = vmatpush3.bf16.msra.mxu0 %v3611_v44  ;;  %v2542_v44 = vsel %vm476_vm1, %v3889_v50, %v3890_v5 }
 0x95e   : > { %3613 = vmatprep.subr.bf16.mxu0 %v3909_v24  ;;  %v3605_v12 = vpack.c.bf16 %v2543_v40, %v2542_v44 }
 0x95f   : > { %3597 = vmatpush3.bf16.msra.mxu1 %v3560_v49 }
 0x960   : > { %3598 = vmatprep.subr.bf16.mxu1 %v3909_v24 }
 0x961   : > { %3615 = vmatpush3.bf16.msra.mxu0 %v3614_v31 }
 0x962   : > { %3616 = vmatprep.subr.bf16.mxu0 %v3909_v24 }
 0x963   : > { %3600 = vmatpush3.bf16.msra.mxu1 %v3563_v1 }
 0x964   : > { %3601 = vmatprep.subr.bf16.mxu1 %v3909_v24 }
 0x965   : > { %3618 = vmatpush3.bf16.msra.mxu0 %v3617_v19  ;;  %v2313_v15 = vpop.permute.xlu1 %2312 }
 0x966   : > { %3619 = vmatprep.subr.bf16.mxu0 %v3909_v24 }
 0x967   : > { %3603 = vmatpush3.bf16.msra.mxu1 %v3584_v61 }
 0x968   : > { %3604 = vmatprep.subr.bf16.mxu1 %v3909_v24 }
 0x969   : > { %3621 = vmatpush3.bf16.msra.mxu0 %v3620_v38 }
 0x96a   : > { %3622 = vmatprep.subr.bf16.mxu0 %v3909_v24 }
 0x96b   : > { %3606 = vmatpush3.bf16.msra.mxu1 %v3605_v12 }
 0x96d   : > { %3624 = vmatpush3.bf16.msra.mxu0 %v3623_v13 }
 0x96e   : > { %3625 = vmatprep.subr.bf16.mxu0 %v3909_v24  ;;  %3351 = vmatmul.mubr.msk.f32.vlgmr.msra.gmra.mrb[20].mxu1 %vm2363_vm8, %v2285_v0 }
 0x971   : > { %3627 = vmatpush3.bf16.msra.mxu0 %v3626_v63 }
 0x974   : > { %3382 = vmatmul.mubr.msk.f32.vlgmr.msra.gmra.mrb[12].mxu0 %vm2363_vm8, %v2285_v0 }
 0xa25   : > { %v2433_v16 = vpop.f32.mrb[18].mxu1 }
 0xa26   : > { %v2434_v19 = vadd.f32 %v2433_v16, %v2313_v15  ;;  %v3290_v8 = vpop.f32.mrb[19].mxu1 }
 0xa28   : > { %2437 = vst [vmem:[%s386_s19] sm:$0xf] %v2434_v19 }
 0xa2b   : > { %v2522_v10 = vpop.f32.mrb[10].mxu0 }
 0xa2c   : > { %v2523_v13 = vadd.f32 %v2522_v10, %v2313_v15  ;;  %v3321_v24 = vpop.f32.mrb[11].mxu0 }
 0xa2e   : > { %2841 = vst [vmem:[%s386_s19 + $0x4] sm:$0xf] %v2523_v13 }
 0xa41   : > { %v2612_v28 = vpop.f32.mrb[20].mxu1 }
 0xa42   : > { %v2613_v29 = vadd.f32 %v2612_v28, %v2313_v15  ;;  %v3352_v31 = vpop.f32.mrb[21].mxu1 }
 0xa44   : > { %2843 = vst [vmem:[%s386_s19 + $0x8] sm:$0xf] %v2613_v29 }
 0xa47   : > { %v2696_v35 = vpop.f32.mrb[12].mxu0 }
 0xa48   : > { %v2697_v36 = vadd.f32 %v2696_v35, %v2313_v15  ;;  %v3383_v38 = vpop.f32.mrb[13].mxu0 }
 0xa4a   : > { %2845 = vst [vmem:[%s386_s19 + $0xc] sm:$0xf] %v2697_v36 }
 0xa4b PF: > { %s21_s17 = sadd.s32 1, %s3902_s17  }
 0xa4c   : > { %p18_p4 = scmp.ge.s32.totalorder %s21_s17, 4  }
 0xa4e   :  { %20 = sbr.rel (!%p18_p4) target bundleno = 1 (0x1), region = 107 }

</bundles_post_ra>
